<compile_context>
chip_gen: v6e
topology: v6e:2x2x1
jax: 0.10.0
libtpu: 0.0.40
codegen_flags: <defaults>
</compile_context>

<pallas_src>
import jax
import jax.numpy as jnp
from jax import lax
from jax.experimental import pallas as pl
from jax.experimental.pallas import tpu as pltpu


def _conv_bn_relu_kernel(x_ref, w_ref, scale_ref, bias_ref, o_ref, acc_ref):
    """3x3 same-conv (dx folded into K) + folded-BN affine + ReLU, one tile.

    x_ref:     (1, H+2, TW, 3*Cin)  bf16, W-im2col'd, zero padded along H
    w_ref:     (3, 3*Cin, Cout)     bf16, indexed by dy  (VMEM resident)
    scale_ref: (1, Cout)            f32 folded BN scale  (VMEM resident)
    bias_ref:  (1, Cout)            f32 folded BN bias   (VMEM resident)
    o_ref:     (1, H, TW, Cout)
    acc_ref:   (H*TW, Cout)         f32 VMEM scratch accumulator
    """
    H, TW, Cout = o_ref.shape[1], o_ref.shape[2], o_ref.shape[3]
    K = x_ref.shape[3]

    # 3 dy taps -> 3 MXU matmuls with K = 3*Cin, accumulated in f32 scratch.
    for dy in range(3):
        lhs = x_ref[0, dy:dy + H].reshape(H * TW, K)
        contrib = jnp.dot(lhs, w_ref[dy], preferred_element_type=jnp.float32)
        if dy == 0:
            acc_ref[...] = contrib
        else:
            acc_ref[...] += contrib

    y = acc_ref[...] * scale_ref[...] + bias_ref[...]   # folded BN (f32)
    y = jnp.maximum(y, 0.0)                             # ReLU
    o_ref[...] = y.reshape(1, H, TW, Cout).astype(o_ref.dtype)


def _pick_tile_w(W, H, K, Cout, budget_bytes=20 * 1024 * 1024):
    """Largest W tile (multiple of 8) whose double-buffered set fits VMEM."""
    candidates = [t for t in (512, 256, 128, 64, 32, 16, 8) if t <= max(W, 8)]
    for tw in candidates:
        in_blk = (H + 2) * tw * K * 2       # bf16 input block
        out_blk = H * tw * Cout * 4         # output block (worst case f32)
        acc = H * tw * Cout * 4             # f32 scratch accumulator
        wgt = 3 * K * Cout * 2 + 2 * Cout * 4
        if 2 * in_blk + 2 * out_blk + acc + wgt <= budget_bytes:
            return tw
    return 8


def conv_bn_relu(x_nhwc, w_hwio, scale, bias, *, compute_dtype=jnp.bfloat16):
    """One (conv3x3 pad=1 => folded BN => ReLU) stage as a tiled pallas_call."""
    N, H, W, Cin = x_nhwc.shape
    Cout = w_hwio.shape[-1]
    K = 3 * Cin

    # Zero pad H/W by 1 and fold the kw taps into channels (im2col along W).
    # One fused XLA layout pass; removes all per-tap slice/reshape copies from
    # the kernel and triples the matmul contraction dim.
    xp = jnp.pad(x_nhwc, ((0, 0), (1, 1), (1, 1), (0, 0)))
    xw = jnp.concatenate(
        [xp[:, :, 0:W, :], xp[:, :, 1:W + 1, :], xp[:, :, 2:W + 2, :]],
        axis=-1).astype(compute_dtype)                    # (N, H+2, W, 3*Cin)

    w2 = w_hwio.reshape(3, K, Cout).astype(compute_dtype)  # (dy, kw*Cin+c, Co)
    scale2 = scale.reshape(1, Cout).astype(jnp.float32)
    bias2 = bias.reshape(1, Cout).astype(jnp.float32)

    TW = _pick_tile_w(W, H, K, Cout)
    n_wt = -(-W // TW)
    Wp = n_wt * TW
    if Wp != W:
        xw = jnp.pad(xw, ((0, 0), (0, 0), (0, Wp - W), (0, 0)))

    out = pl.pallas_call(
        _conv_bn_relu_kernel,
        out_shape=jax.ShapeDtypeStruct((N, H, Wp, Cout), x_nhwc.dtype),
        grid=(N, n_wt),
        in_specs=[
            pl.BlockSpec((1, H + 2, TW, K), lambda n, j: (n, 0, j, 0)),
            pl.BlockSpec((3, K, Cout), lambda n, j: (0, 0, 0)),   # resident
            pl.BlockSpec((1, Cout), lambda n, j: (0, 0)),         # resident
            pl.BlockSpec((1, Cout), lambda n, j: (0, 0)),         # resident
        ],
        out_specs=pl.BlockSpec((1, H, TW, Cout), lambda n, j: (n, 0, j, 0)),
        scratch_shapes=[pltpu.VMEM((H * TW, Cout), jnp.float32)],
        compiler_params=pltpu.CompilerParams(
            dimension_semantics=("parallel", "parallel"),
            vmem_limit_bytes=32 * 1024 * 1024),
        cost_estimate=pl.CostEstimate(
            flops=2 * N * H * Wp * 3 * K * Cout,
            transcendentals=0,
            bytes_accessed=(xw.size * 2 + w2.size * 2
                            + N * H * Wp * Cout * x_nhwc.dtype.itemsize)),
    )(xw, w2, scale2, bias2)

    if Wp != W:
        out = out[:, :, :W, :]
    return out


def _fold_bn(conv_bias, gamma, beta, running_mean, running_var, eps=1e-5):
    scale = gamma / jnp.sqrt(running_var + eps)
    bias = beta + scale * (conv_bias - running_mean)
    return scale, bias


def init_double_conv_params(key, in_channels, out_channels, mid_channels=None):
    """Deterministic synthetic parameters, shapes match the PyTorch module."""
    if not mid_channels:
        mid_channels = out_channels
    ks = jax.random.split(key, 12)

    def conv_params(kw, kb, cin, cout):
        fan_in = cin * 9
        bound = 1.0 / jnp.sqrt(fan_in)
        w = jax.random.uniform(kw, (cout, cin, 3, 3), jnp.float32, -bound, bound)
        b = jax.random.uniform(kb, (cout,), jnp.float32, -bound, bound)
        return w, b

    def bn_params(kg, kb, km, kv, c):
        gamma = 1.0 + 0.1 * jax.random.normal(kg, (c,), jnp.float32)
        beta = 0.1 * jax.random.normal(kb, (c,), jnp.float32)
        mean = 0.1 * jax.random.normal(km, (c,), jnp.float32)
        var = jnp.abs(1.0 + 0.1 * jax.random.normal(kv, (c,), jnp.float32))
        return gamma, beta, mean, var

    w1, b1 = conv_params(ks[0], ks[1], in_channels, mid_channels)
    bn1 = bn_params(ks[2], ks[3], ks[4], ks[5], mid_channels)
    w2, b2 = conv_params(ks[6], ks[7], mid_channels, out_channels)
    bn2 = bn_params(ks[8], ks[9], ks[10], ks[11], out_channels)
    return dict(w1=w1, b1=b1, bn1=bn1, w2=w2, b2=b2, bn2=bn2)


@jax.jit
def double_conv(x_nchw, params):
    """Forward pass of DoubleConv. Input/output in NCHW (PyTorch layout)."""
    x = jnp.transpose(x_nchw, (0, 2, 3, 1))            # NCHW -> NHWC
    w1 = jnp.transpose(params["w1"], (2, 3, 1, 0))     # OIHW -> HWIO
    w2 = jnp.transpose(params["w2"], (2, 3, 1, 0))
    s1, bb1 = _fold_bn(params["b1"], *params["bn1"])
    s2, bb2 = _fold_bn(params["b2"], *params["bn2"])
    x = conv_bn_relu(x, w1, s1, bb1)
    x = conv_bn_relu(x, w2, s2, bb2)
    return jnp.transpose(x, (0, 3, 1, 2))              # NHWC -> NCHW


def _reference_double_conv(x_nchw, params):
    """Pure-JAX f32 reference (lax conv, eval-mode BN) for correctness check."""
    def block(x, w, b, bn):
        y = lax.conv_general_dilated(
            x, w, window_strides=(1, 1), padding="SAME",
            dimension_numbers=("NCHW", "OIHW", "NCHW"))
        y = y + b[None, :, None, None]
        gamma, beta, mean, var = bn
        y = gamma[None, :, None, None] * (y - mean[None, :, None, None]) / \
            jnp.sqrt(var[None, :, None, None] + 1e-5) + beta[None, :, None, None]
        return jnp.maximum(y, 0.0)

    x = block(x_nchw, params["w1"], params["b1"], params["bn1"])
    x = block(x, params["w2"], params["b2"], params["bn2"])
    return x


if __name__ == "__main__":
    key = jax.random.PRNGKey(0)
    k_x, k_p = jax.random.split(key)

    N, Cin, H, W = 2, 4, 16, 16
    Cout = 8

    x = jax.random.normal(k_x, (N, Cin, H, W), jnp.float32)
    params = init_double_conv_params(k_p, Cin, Cout)

    out = jax.block_until_ready(double_conv(x, params))
    ref = _reference_double_conv(x, params)

    assert out.shape == (N, Cout, H, W), out.shape
    # bf16 MXU operands (with f32 accumulation) vs f32 reference -> bf16-level
    # tolerance.
    max_err = float(jnp.max(jnp.abs(out - ref)))
    assert jnp.allclose(out, ref, atol=5e-2, rtol=5e-2), max_err

    print("KERNEL_OK")
</pallas_src>

<mosaic_0001>
module attributes {stable_mosaic.version = 11 : i64} {
  func.func @_conv_bn_relu_kernel(%arg0: i32, %arg1: i32, %arg2: memref<1x18x16x12xbf16, #tpu.memory_space<vmem>>, %arg3: memref<3x12x8xbf16, #tpu.memory_space<vmem>>, %arg4: memref<1x8xf32, #tpu.memory_space<vmem>>, %arg5: memref<1x8xf32, #tpu.memory_space<vmem>>, %arg6: memref<1x16x16x8xf32, #tpu.memory_space<vmem>>, %arg7: memref<256x8xf32, #tpu.memory_space<vmem>>) attributes {dimension_semantics = [#tpu.dimension_semantics<parallel>, #tpu.dimension_semantics<parallel>], iteration_bounds = array<i64: 2, 1>, scalar_prefetch = 0 : i64, scratch_operands = 1 : i64, tpu.core_type = #tpu.core_type<tc>, window_params = [{transform_indices = @transform_0, window_bounds = array<i64: 1, 18, 16, 12>}, {pipeline_mode = #tpu.pipeline_mode<synchronous>, transform_indices = @transform_1, window_bounds = array<i64: 3, 12, 8>}, {pipeline_mode = #tpu.pipeline_mode<synchronous>, transform_indices = @transform_2, window_bounds = array<i64: 1, 8>}, {pipeline_mode = #tpu.pipeline_mode<synchronous>, transform_indices = @transform_3, window_bounds = array<i64: 1, 8>}, {transform_indices = @transform_4, window_bounds = array<i64: 1, 16, 16, 8>}]} {
    %c0 = arith.constant 0 : index
    %c0_0 = arith.constant 0 : index
    %c0_1 = arith.constant 0 : index
    %c0_2 = arith.constant 0 : index
    %0 = vector.load %arg2[%c0, %c0_0, %c0_1, %c0_2] : memref<1x18x16x12xbf16, #tpu.memory_space<vmem>>, vector<1x16x16x12xbf16>
    %1 = vector.shape_cast %0 : vector<1x16x16x12xbf16> to vector<16x16x12xbf16>
    %2 = vector.shape_cast %1 : vector<16x16x12xbf16> to vector<256x12xbf16>
    %c0_3 = arith.constant 0 : index
    %c0_4 = arith.constant 0 : index
    %c0_5 = arith.constant 0 : index
    %3 = vector.load %arg3[%c0_3, %c0_4, %c0_5] : memref<3x12x8xbf16, #tpu.memory_space<vmem>>, vector<1x12x8xbf16>
    %4 = vector.shape_cast %3 : vector<1x12x8xbf16> to vector<12x8xbf16>
    %cst = arith.constant dense<0.000000e+00> : vector<256x8xf32>
    %5 = tpu.matmul %2, %4, %cst {dimension_numbers = #tpu.dot_dimension_numbers<[1], [0], [0], [1], [0, 0, 1, 1], [], []>} : vector<256x12xbf16>, vector<12x8xbf16>, vector<256x8xf32> -> vector<256x8xf32>
    %c0_6 = arith.constant 0 : index
    %c0_7 = arith.constant 0 : index
    %6 = vector.load %arg7[%c0_6, %c0_7] : memref<256x8xf32, #tpu.memory_space<vmem>>, vector<256x8xf32>
    tpu.vector_store %arg7[%c0_6, %c0_7], %5 {strides = array<i32>} : memref<256x8xf32, #tpu.memory_space<vmem>>, vector<256x8xf32>,
    %c0_8 = arith.constant 0 : index
    %c1 = arith.constant 1 : index
    %c0_9 = arith.constant 0 : index
    %c0_10 = arith.constant 0 : index
    %7 = vector.load %arg2[%c0_8, %c1, %c0_9, %c0_10] : memref<1x18x16x12xbf16, #tpu.memory_space<vmem>>, vector<1x16x16x12xbf16>
    %8 = vector.shape_cast %7 : vector<1x16x16x12xbf16> to vector<16x16x12xbf16>
    %9 = vector.shape_cast %8 : vector<16x16x12xbf16> to vector<256x12xbf16>
    %c1_11 = arith.constant 1 : index
    %c0_12 = arith.constant 0 : index
    %c0_13 = arith.constant 0 : index
    %10 = vector.load %arg3[%c1_11, %c0_12, %c0_13] : memref<3x12x8xbf16, #tpu.memory_space<vmem>>, vector<1x12x8xbf16>
    %11 = vector.shape_cast %10 : vector<1x12x8xbf16> to vector<12x8xbf16>
    %cst_14 = arith.constant dense<0.000000e+00> : vector<256x8xf32>
    %12 = tpu.matmul %9, %11, %cst_14 {dimension_numbers = #tpu.dot_dimension_numbers<[1], [0], [0], [1], [0, 0, 1, 1], [], []>} : vector<256x12xbf16>, vector<12x8xbf16>, vector<256x8xf32> -> vector<256x8xf32>
    %c0_15 = arith.constant 0 : index
    %c0_16 = arith.constant 0 : index
    %13 = vector.load %arg7[%c0_15, %c0_16] : memref<256x8xf32, #tpu.memory_space<vmem>>, vector<256x8xf32>
    %14 = arith.addf %13, %12 : vector<256x8xf32>
    %c0_17 = arith.constant 0 : index
    %c0_18 = arith.constant 0 : index
    %15 = vector.load %arg7[%c0_17, %c0_18] : memref<256x8xf32, #tpu.memory_space<vmem>>, vector<256x8xf32>
    tpu.vector_store %arg7[%c0_17, %c0_18], %14 {strides = array<i32>} : memref<256x8xf32, #tpu.memory_space<vmem>>, vector<256x8xf32>,
    %c0_19 = arith.constant 0 : index
    %c2 = arith.constant 2 : index
    %c0_20 = arith.constant 0 : index
    %c0_21 = arith.constant 0 : index
    %16 = vector.load %arg2[%c0_19, %c2, %c0_20, %c0_21] : memref<1x18x16x12xbf16, #tpu.memory_space<vmem>>, vector<1x16x16x12xbf16>
    %17 = vector.shape_cast %16 : vector<1x16x16x12xbf16> to vector<16x16x12xbf16>
    %18 = vector.shape_cast %17 : vector<16x16x12xbf16> to vector<256x12xbf16>
    %c2_22 = arith.constant 2 : index
    %c0_23 = arith.constant 0 : index
    %c0_24 = arith.constant 0 : index
    %19 = vector.load %arg3[%c2_22, %c0_23, %c0_24] : memref<3x12x8xbf16, #tpu.memory_space<vmem>>, vector<1x12x8xbf16>
    %20 = vector.shape_cast %19 : vector<1x12x8xbf16> to vector<12x8xbf16>
    %cst_25 = arith.constant dense<0.000000e+00> : vector<256x8xf32>
    %21 = tpu.matmul %18, %20, %cst_25 {dimension_numbers = #tpu.dot_dimension_numbers<[1], [0], [0], [1], [0, 0, 1, 1], [], []>} : vector<256x12xbf16>, vector<12x8xbf16>, vector<256x8xf32> -> vector<256x8xf32>
    %c0_26 = arith.constant 0 : index
    %c0_27 = arith.constant 0 : index
    %22 = vector.load %arg7[%c0_26, %c0_27] : memref<256x8xf32, #tpu.memory_space<vmem>>, vector<256x8xf32>
    %23 = arith.addf %22, %21 : vector<256x8xf32>
    %c0_28 = arith.constant 0 : index
    %c0_29 = arith.constant 0 : index
    %24 = vector.load %arg7[%c0_28, %c0_29] : memref<256x8xf32, #tpu.memory_space<vmem>>, vector<256x8xf32>
    tpu.vector_store %arg7[%c0_28, %c0_29], %23 {strides = array<i32>} : memref<256x8xf32, #tpu.memory_space<vmem>>, vector<256x8xf32>,
    %c0_30 = arith.constant 0 : index
    %c0_31 = arith.constant 0 : index
    %25 = vector.load %arg7[%c0_30, %c0_31] : memref<256x8xf32, #tpu.memory_space<vmem>>, vector<256x8xf32>
    %c0_32 = arith.constant 0 : index
    %c0_33 = arith.constant 0 : index
    %26 = vector.load %arg4[%c0_32, %c0_33] : memref<1x8xf32, #tpu.memory_space<vmem>>, vector<1x8xf32>
    %27 = vector.broadcast %26 : vector<1x8xf32> to vector<256x8xf32>
    %28 = arith.mulf %25, %27 : vector<256x8xf32>
    %c0_34 = arith.constant 0 : index
    %c0_35 = arith.constant 0 : index
    %29 = vector.load %arg5[%c0_34, %c0_35] : memref<1x8xf32, #tpu.memory_space<vmem>>, vector<1x8xf32>
    %30 = vector.broadcast %29 : vector<1x8xf32> to vector<256x8xf32>
    %31 = arith.addf %28, %30 : vector<256x8xf32>
    %cst_36 = arith.constant 0.000000e+00 : f32
    %32 = vector.broadcast %cst_36 : f32 to vector<256x8xf32>
    %33 = arith.maximumf %31, %32 : vector<256x8xf32>
    %34 = vector.shape_cast %33 : vector<256x8xf32> to vector<1x16x16x8xf32>
    %c0_37 = arith.constant 0 : index
    %c0_38 = arith.constant 0 : index
    %c0_39 = arith.constant 0 : index
    %c0_40 = arith.constant 0 : index
    %35 = vector.load %arg6[%c0_37, %c0_38, %c0_39, %c0_40] : memref<1x16x16x8xf32, #tpu.memory_space<vmem>>, vector<1x16x16x8xf32>
    tpu.vector_store %arg6[%c0_37, %c0_38, %c0_39, %c0_40], %34 {strides = array<i32>} : memref<1x16x16x8xf32, #tpu.memory_space<vmem>>, vector<1x16x16x8xf32>,
    return
  }
  func.func @transform_0(%arg0: i32, %arg1: i32) -> (i32, i32, i32, i32) {
    %c0_i32 = arith.constant 0 : i32
    %c0_i32_0 = arith.constant 0 : i32
    %c0_i32_1 = arith.constant 0 : i32
    return %arg0, %c0_i32, %arg1, %c0_i32_0 : i32, i32, i32, i32
  }
  func.func @transform_1(%arg0: i32, %arg1: i32) -> (i32, i32, i32) {
    %c0_i32 = arith.constant 0 : i32
    %c0_i32_0 = arith.constant 0 : i32
    %c0_i32_1 = arith.constant 0 : i32
    %c0_i32_2 = arith.constant 0 : i32
    return %c0_i32, %c0_i32_0, %c0_i32_1 : i32, i32, i32
  }
  func.func @transform_2(%arg0: i32, %arg1: i32) -> (i32, i32) {
    %c0_i32 = arith.constant 0 : i32
    %c0_i32_0 = arith.constant 0 : i32
    %c0_i32_1 = arith.constant 0 : i32
    return %c0_i32, %c0_i32_0 : i32, i32
  }
  func.func @transform_3(%arg0: i32, %arg1: i32) -> (i32, i32) {
    %c0_i32 = arith.constant 0 : i32
    %c0_i32_0 = arith.constant 0 : i32
    %c0_i32_1 = arith.constant 0 : i32
    return %c0_i32, %c0_i32_0 : i32, i32
  }
  func.func @transform_4(%arg0: i32, %arg1: i32) -> (i32, i32, i32, i32) {
    %c0_i32 = arith.constant 0 : i32
    %c0_i32_0 = arith.constant 0 : i32
    %c0_i32_1 = arith.constant 0 : i32
    return %arg0, %c0_i32, %arg1, %c0_i32_0 : i32, i32, i32, i32
  }
}

module attributes {stable_mosaic.version = 11 : i64} {
  func.func @_conv_bn_relu_kernel(%arg0: i32, %arg1: i32, %arg2: memref<1x18x16x24xbf16, #tpu.memory_space<vmem>>, %arg3: memref<3x24x8xbf16, #tpu.memory_space<vmem>>, %arg4: memref<1x8xf32, #tpu.memory_space<vmem>>, %arg5: memref<1x8xf32, #tpu.memory_space<vmem>>, %arg6: memref<1x16x16x8xf32, #tpu.memory_space<vmem>>, %arg7: memref<256x8xf32, #tpu.memory_space<vmem>>) attributes {dimension_semantics = [#tpu.dimension_semantics<parallel>, #tpu.dimension_semantics<parallel>], iteration_bounds = array<i64: 2, 1>, scalar_prefetch = 0 : i64, scratch_operands = 1 : i64, tpu.core_type = #tpu.core_type<tc>, window_params = [{transform_indices = @transform_0, window_bounds = array<i64: 1, 18, 16, 24>}, {pipeline_mode = #tpu.pipeline_mode<synchronous>, transform_indices = @transform_1, window_bounds = array<i64: 3, 24, 8>}, {pipeline_mode = #tpu.pipeline_mode<synchronous>, transform_indices = @transform_2, window_bounds = array<i64: 1, 8>}, {pipeline_mode = #tpu.pipeline_mode<synchronous>, transform_indices = @transform_3, window_bounds = array<i64: 1, 8>}, {transform_indices = @transform_4, window_bounds = array<i64: 1, 16, 16, 8>}]} {
    %c0 = arith.constant 0 : index
    %c0_0 = arith.constant 0 : index
    %c0_1 = arith.constant 0 : index
    %c0_2 = arith.constant 0 : index
    %0 = vector.load %arg2[%c0, %c0_0, %c0_1, %c0_2] : memref<1x18x16x24xbf16, #tpu.memory_space<vmem>>, vector<1x16x16x24xbf16>
    %1 = vector.shape_cast %0 : vector<1x16x16x24xbf16> to vector<16x16x24xbf16>
    %2 = vector.shape_cast %1 : vector<16x16x24xbf16> to vector<256x24xbf16>
    %c0_3 = arith.constant 0 : index
    %c0_4 = arith.constant 0 : index
    %c0_5 = arith.constant 0 : index
    %3 = vector.load %arg3[%c0_3, %c0_4, %c0_5] : memref<3x24x8xbf16, #tpu.memory_space<vmem>>, vector<1x24x8xbf16>
    %4 = vector.shape_cast %3 : vector<1x24x8xbf16> to vector<24x8xbf16>
    %cst = arith.constant dense<0.000000e+00> : vector<256x8xf32>
    %5 = tpu.matmul %2, %4, %cst {dimension_numbers = #tpu.dot_dimension_numbers<[1], [0], [0], [1], [0, 0, 1, 1], [], []>} : vector<256x24xbf16>, vector<24x8xbf16>, vector<256x8xf32> -> vector<256x8xf32>
    %c0_6 = arith.constant 0 : index
    %c0_7 = arith.constant 0 : index
    %6 = vector.load %arg7[%c0_6, %c0_7] : memref<256x8xf32, #tpu.memory_space<vmem>>, vector<256x8xf32>
    tpu.vector_store %arg7[%c0_6, %c0_7], %5 {strides = array<i32>} : memref<256x8xf32, #tpu.memory_space<vmem>>, vector<256x8xf32>,
    %c0_8 = arith.constant 0 : index
    %c1 = arith.constant 1 : index
    %c0_9 = arith.constant 0 : index
    %c0_10 = arith.constant 0 : index
    %7 = vector.load %arg2[%c0_8, %c1, %c0_9, %c0_10] : memref<1x18x16x24xbf16, #tpu.memory_space<vmem>>, vector<1x16x16x24xbf16>
    %8 = vector.shape_cast %7 : vector<1x16x16x24xbf16> to vector<16x16x24xbf16>
    %9 = vector.shape_cast %8 : vector<16x16x24xbf16> to vector<256x24xbf16>
    %c1_11 = arith.constant 1 : index
    %c0_12 = arith.constant 0 : index
    %c0_13 = arith.constant 0 : index
    %10 = vector.load %arg3[%c1_11, %c0_12, %c0_13] : memref<3x24x8xbf16, #tpu.memory_space<vmem>>, vector<1x24x8xbf16>
    %11 = vector.shape_cast %10 : vector<1x24x8xbf16> to vector<24x8xbf16>
    %cst_14 = arith.constant dense<0.000000e+00> : vector<256x8xf32>
    %12 = tpu.matmul %9, %11, %cst_14 {dimension_numbers = #tpu.dot_dimension_numbers<[1], [0], [0], [1], [0, 0, 1, 1], [], []>} : vector<256x24xbf16>, vector<24x8xbf16>, vector<256x8xf32> -> vector<256x8xf32>
    %c0_15 = arith.constant 0 : index
    %c0_16 = arith.constant 0 : index
    %13 = vector.load %arg7[%c0_15, %c0_16] : memref<256x8xf32, #tpu.memory_space<vmem>>, vector<256x8xf32>
    %14 = arith.addf %13, %12 : vector<256x8xf32>
    %c0_17 = arith.constant 0 : index
    %c0_18 = arith.constant 0 : index
    %15 = vector.load %arg7[%c0_17, %c0_18] : memref<256x8xf32, #tpu.memory_space<vmem>>, vector<256x8xf32>
    tpu.vector_store %arg7[%c0_17, %c0_18], %14 {strides = array<i32>} : memref<256x8xf32, #tpu.memory_space<vmem>>, vector<256x8xf32>,
    %c0_19 = arith.constant 0 : index
    %c2 = arith.constant 2 : index
    %c0_20 = arith.constant 0 : index
    %c0_21 = arith.constant 0 : index
    %16 = vector.load %arg2[%c0_19, %c2, %c0_20, %c0_21] : memref<1x18x16x24xbf16, #tpu.memory_space<vmem>>, vector<1x16x16x24xbf16>
    %17 = vector.shape_cast %16 : vector<1x16x16x24xbf16> to vector<16x16x24xbf16>
    %18 = vector.shape_cast %17 : vector<16x16x24xbf16> to vector<256x24xbf16>
    %c2_22 = arith.constant 2 : index
    %c0_23 = arith.constant 0 : index
    %c0_24 = arith.constant 0 : index
    %19 = vector.load %arg3[%c2_22, %c0_23, %c0_24] : memref<3x24x8xbf16, #tpu.memory_space<vmem>>, vector<1x24x8xbf16>
    %20 = vector.shape_cast %19 : vector<1x24x8xbf16> to vector<24x8xbf16>
    %cst_25 = arith.constant dense<0.000000e+00> : vector<256x8xf32>
    %21 = tpu.matmul %18, %20, %cst_25 {dimension_numbers = #tpu.dot_dimension_numbers<[1], [0], [0], [1], [0, 0, 1, 1], [], []>} : vector<256x24xbf16>, vector<24x8xbf16>, vector<256x8xf32> -> vector<256x8xf32>
    %c0_26 = arith.constant 0 : index
    %c0_27 = arith.constant 0 : index
    %22 = vector.load %arg7[%c0_26, %c0_27] : memref<256x8xf32, #tpu.memory_space<vmem>>, vector<256x8xf32>
    %23 = arith.addf %22, %21 : vector<256x8xf32>
    %c0_28 = arith.constant 0 : index
    %c0_29 = arith.constant 0 : index
    %24 = vector.load %arg7[%c0_28, %c0_29] : memref<256x8xf32, #tpu.memory_space<vmem>>, vector<256x8xf32>
    tpu.vector_store %arg7[%c0_28, %c0_29], %23 {strides = array<i32>} : memref<256x8xf32, #tpu.memory_space<vmem>>, vector<256x8xf32>,
    %c0_30 = arith.constant 0 : index
    %c0_31 = arith.constant 0 : index
    %25 = vector.load %arg7[%c0_30, %c0_31] : memref<256x8xf32, #tpu.memory_space<vmem>>, vector<256x8xf32>
    %c0_32 = arith.constant 0 : index
    %c0_33 = arith.constant 0 : index
    %26 = vector.load %arg4[%c0_32, %c0_33] : memref<1x8xf32, #tpu.memory_space<vmem>>, vector<1x8xf32>
    %27 = vector.broadcast %26 : vector<1x8xf32> to vector<256x8xf32>
    %28 = arith.mulf %25, %27 : vector<256x8xf32>
    %c0_34 = arith.constant 0 : index
    %c0_35 = arith.constant 0 : index
    %29 = vector.load %arg5[%c0_34, %c0_35] : memref<1x8xf32, #tpu.memory_space<vmem>>, vector<1x8xf32>
    %30 = vector.broadcast %29 : vector<1x8xf32> to vector<256x8xf32>
    %31 = arith.addf %28, %30 : vector<256x8xf32>
    %cst_36 = arith.constant 0.000000e+00 : f32
    %32 = vector.broadcast %cst_36 : f32 to vector<256x8xf32>
    %33 = arith.maximumf %31, %32 : vector<256x8xf32>
    %34 = vector.shape_cast %33 : vector<256x8xf32> to vector<1x16x16x8xf32>
    %c0_37 = arith.constant 0 : index
    %c0_38 = arith.constant 0 : index
    %c0_39 = arith.constant 0 : index
    %c0_40 = arith.constant 0 : index
    %35 = vector.load %arg6[%c0_37, %c0_38, %c0_39, %c0_40] : memref<1x16x16x8xf32, #tpu.memory_space<vmem>>, vector<1x16x16x8xf32>
    tpu.vector_store %arg6[%c0_37, %c0_38, %c0_39, %c0_40], %34 {strides = array<i32>} : memref<1x16x16x8xf32, #tpu.memory_space<vmem>>, vector<1x16x16x8xf32>,
    return
  }
  func.func @transform_0(%arg0: i32, %arg1: i32) -> (i32, i32, i32, i32) {
    %c0_i32 = arith.constant 0 : i32
    %c0_i32_0 = arith.constant 0 : i32
    %c0_i32_1 = arith.constant 0 : i32
    return %arg0, %c0_i32, %arg1, %c0_i32_0 : i32, i32, i32, i32
  }
  func.func @transform_1(%arg0: i32, %arg1: i32) -> (i32, i32, i32) {
    %c0_i32 = arith.constant 0 : i32
    %c0_i32_0 = arith.constant 0 : i32
    %c0_i32_1 = arith.constant 0 : i32
    %c0_i32_2 = arith.constant 0 : i32
    return %c0_i32, %c0_i32_0, %c0_i32_1 : i32, i32, i32
  }
  func.func @transform_2(%arg0: i32, %arg1: i32) -> (i32, i32) {
    %c0_i32 = arith.constant 0 : i32
    %c0_i32_0 = arith.constant 0 : i32
    %c0_i32_1 = arith.constant 0 : i32
    return %c0_i32, %c0_i32_0 : i32, i32
  }
  func.func @transform_3(%arg0: i32, %arg1: i32) -> (i32, i32) {
    %c0_i32 = arith.constant 0 : i32
    %c0_i32_0 = arith.constant 0 : i32
    %c0_i32_1 = arith.constant 0 : i32
    return %c0_i32, %c0_i32_0 : i32, i32
  }
  func.func @transform_4(%arg0: i32, %arg1: i32) -> (i32, i32, i32, i32) {
    %c0_i32 = arith.constant 0 : i32
    %c0_i32_0 = arith.constant 0 : i32
    %c0_i32_1 = arith.constant 0 : i32
    return %arg0, %c0_i32, %arg1, %c0_i32_0 : i32, i32, i32, i32
  }
}

</mosaic_0001>

<bundles_post_ra>
// kernel: double_conv.2
= control target key start
LH: loop header
LB: loop body
LE: loop exit
PB: predicated region body
PF: predicated region fallthrough
CT: control target
= control target key end

     0   :  { %s2187_s15 = smov 0   ;;  %s2189_s16 = smov 0   ;;  %s2574_s0 = inlined_call_operand.vmem [shape: bf16[2,18,16,12], index: 0, kind: input, shape index: {}]   ;;  %s2575_s1 = inlined_call_operand.vmem [shape: bf16[3,12,8], index: 1, kind: input, shape index: {}]   ;;  %s2576_s2 = inlined_call_operand.vmem [shape: f32[1,8], index: 2, kind: input, shape index: {}]   ;;  %s2577_s3 = inlined_call_operand.vmem [shape: f32[1,8], index: 3, kind: input, shape index: {}]   ;;  %s2578_s4 = inlined_call_operand.vmem [shape: f32[2,16,16,8], index: 4, kind: output, shape index: {}]  }
   0x1   :  { %s2191_s17 = smov 0  }
   0x2 LB: > { %s26_s18 = sadd.s32 1, %s2156_s16  ;;  %p1727_p0 = scmp.ge.s32.totalorder %s2160_s17, 1  ;;  %s2160_s17 = sphi %s2191_s17, %s14_s17   ;;  %s2156_s16 = sphi %s2189_s16, %s2580_s16   ;;  %s2152_s15 = sphi %s2187_s15, %s2579_s15  }
   0x3   : > { %p28_p1 = scmp.ge.s32.totalorder %s26_s18, 2  ;;  %p183_p2 = scmp.lt.s32.totalorder %s2160_s17, 3 }
   0x5   : > { %s2582_s18 = smov (%p28_p1, %s26_s18), 0  ;;  %p184_p3 = pnand %p1727_p0, %p183_p2 }
   0x6   : > { %p218_p4 = scmp.lt.s32.totalorder (!%p184_p3), %s2152_s15, 1 }
   0x7   : > { %187 = sbr.rel (%p184_p3) target bundleno = 333 (0x14d), region = 36 }
   0xc   : > { %v2087_v0 = vld [vmem:[%s2575_s1] sm:$0x3f]   ;;  %vm406_vm0 = vcmask 1045504   ;;  %v2089_v2 = vld [vmem:[%s2575_s1 + $0x8] sm:$0x3f]   ;;  %s2584_s15 = smov (!%p218_p4, %s2152_s15), 1 }
   0xd   : > { %2059 = vmatprep.subr.msk.bf16.mxu1 %vm406_vm0, %v2087_v0  ;;  %v408_v1 = vsel %vm406_vm0, %v2087_v0, 0  ;;  %2058 = vmatprep.subr.msk.bf16.mxu0 %vm406_vm0, %v2087_v0  ;;  %v2095_v3 = vld [vmem:[%s2575_s1 + $0x10] sm:$0x3f]   ;;  %s2062_s25 = smul.u32 144, %s2584_s15  ;;  %vm357_vm1 = vcmask 97280   ;;  %v774_v6 = vsel %vm406_vm0, %v2089_v2, 0 }
   0xe   : > { %2057 = vmatpush3.bf16.msra.mxu1 %v408_v1  ;;  %1955 = vmatpush3.bf16.msra.mxu0 %v408_v1  ;;  %v1203_v9 = vsel %vm406_vm0, %v2095_v3, 0  ;;  %vm571_vm2 = vcmask 64512   ;;  %s1902_s7 = sshll.u32 %s2584_s15, 8 }
   0xf   : > { %2060 = vmatprep.subr.msk.bf16.mxu1 %vm406_vm0, %v2089_v2  ;;  %2061 = vmatprep.subr.msk.bf16.mxu0 %vm406_vm0, %v2095_v3  ;;  %s2225_s28 = scalar_lea.vmem %s2574_s0, %s2062_s25  ;;  %s2391_s10 = scalar_lea.vmem %s2578_s4, %s1902_s7 }
  0x10   : > { %v2088_v4 = vld [vmem:[%s2225_s28 + $0x40] sm:$0xff]   ;;  %v2090_v5 = vld [vmem:[%s2225_s28 + $0x48] sm:$0xff]   ;;  %v2093_v10 = vld [vmem:[%s2225_s28 + $0x50] sm:$0xff]  }
  0x11   : > { %1972 = vmatprep.mubr.msk.bf16.mxu1 %vm357_vm1, %v2088_v4  ;;  %v2091_v7 = vld [vmem:[%s2225_s28] sm:$0xff]   ;;  %v2092_v8 = vld [vmem:[%s2225_s28 + $0x8] sm:$0xff]   ;;  %v2096_v11 = vld [vmem:[%s2225_s28 + $0x10] sm:$0xff]  }
  0x12   : > { %1973 = vmatmul.mubr.msk.bf16.vlgmr.msra.gmra.mxu1 %vm357_vm1, %v2090_v5  ;;  %1956 = vmatprep.mubr.msk.bf16.mxu0 %vm357_vm1, %v2091_v7  ;;  %v2094_v12 = vld [vmem:[%s2225_s28 + $0x58] sm:$0xff]   ;;  %v2098_v13 = vld [vmem:[%s2225_s28 + $0x60] sm:$0xff]   ;;  %v2099_v16 = vld [vmem:[%s2225_s28 + $0x68] sm:$0xff]  }
  0x13   : > { %1989 = vmatpush3.bf16.msra.mxu1 %v774_v6  ;;  %1957 = vmatmul.mubr.msk.bf16.vlgmr.msra.gmra.mxu0 %vm357_vm1, %v2092_v8  ;;  %v2097_v14 = vld [vmem:[%s2225_s28 + $0x18] sm:$0xff]   ;;  %v2100_v15 = vld [vmem:[%s2225_s28 + $0x20] sm:$0xff]   ;;  %v2102_v17 = vld [vmem:[%s2225_s28 + $0x70] sm:$0xff]  }
  0x14   : > { %1976 = vmatprep.mubr.msk.bf16.mxu1 %vm357_vm1, %v2093_v10  ;;  %2023 = vmatpush3.bf16.msra.mxu0 %v1203_v9  ;;  %v2101_v18 = vld [vmem:[%s2225_s28 + $0x28] sm:$0xff]   ;;  %v2104_v19 = vld [vmem:[%s2225_s28 + $0x30] sm:$0xff]   ;;  %v2103_v20 = vld [vmem:[%s2225_s28 + $0x78] sm:$0xff]  }
  0x15   : > { %1960 = vmatprep.mubr.msk.bf16.mxu0 %vm357_vm1, %v2096_v11  ;;  %v2106_v21 = vld [vmem:[%s2225_s28 + $0x8] sm:$0xff]   ;;  %v2105_v22 = vld [vmem:[%s2225_s28 + $0x38] sm:$0xff]   ;;  %v2108_v23 = vld [vmem:[%s2225_s28 + $0x10] sm:$0xff]  }
  0x16   : > { %v2107_v24 = vld [vmem:[%s2225_s28 + $0x10] sm:$0xff]   ;;  %v2110_v25 = vld [vmem:[%s2225_s28 + $0x18] sm:$0xff]   ;;  %v2112_v27 = vld [vmem:[%s2225_s28 + $0x20] sm:$0xff]  }
  0x17   : > { %v2109_v26 = vld [vmem:[%s2225_s28 + $0x18] sm:$0xff]   ;;  %v2111_v28 = vld [vmem:[%s2225_s28 + $0x20] sm:$0xff]   ;;  %v2114_v29 = vld [vmem:[%s2225_s28 + $0x28] sm:$0xff]  }
  0x18   : > { %v2113_v30 = vld [vmem:[%s2225_s28 + $0x28] sm:$0xff]   ;;  %v2116_v31 = vld [vmem:[%s2225_s28 + $0x30] sm:$0xff]   ;;  %v2118_v33 = vld [vmem:[%s2225_s28 + $0x38] sm:$0xff]  }
  0x19   : > { %v2115_v32 = vld [vmem:[%s2225_s28 + $0x30] sm:$0xff]   ;;  %v2117_v34 = vld [vmem:[%s2225_s28 + $0x38] sm:$0xff]   ;;  %v2120_v35 = vld [vmem:[%s2225_s28 + $0x40] sm:$0xff]  }
  0x1a   : > { %1977 = vmatmul.mubr.msk.bf16.gmra.mxu1 %vm357_vm1, %v2094_v12  ;;  %v2119_v36 = vld [vmem:[%s2225_s28 + $0x40] sm:$0xff]   ;;  %v2122_v37 = vld [vmem:[%s2225_s28 + $0x48] sm:$0xff]   ;;  %v2124_v39 = vld [vmem:[%s2225_s28 + $0x50] sm:$0xff]  }
  0x1b   : > { %1980 = vmatprep.mubr.msk.bf16.mxu1 %vm357_vm1, %v2098_v13  ;;  %1961 = vmatmul.mubr.msk.bf16.gmra.mxu0 %vm357_vm1, %v2097_v14  ;;  %v2121_v38 = vld [vmem:[%s2225_s28 + $0x48] sm:$0xff]   ;;  %v2123_v40 = vld [vmem:[%s2225_s28 + $0x50] sm:$0xff]   ;;  %v2126_v41 = vld [vmem:[%s2225_s28 + $0x58] sm:$0xff]  }
  0x1c   : > { %1964 = vmatprep.mubr.msk.bf16.mxu0 %vm357_vm1, %v2100_v15  ;;  %v2125_v42 = vld [vmem:[%s2225_s28 + $0x58] sm:$0xff]   ;;  %v2128_v43 = vld [vmem:[%s2225_s28 + $0x60] sm:$0xff]   ;;  %v2130_v45 = vld [vmem:[%s2225_s28 + $0x68] sm:$0xff]  }
  0x1d   : > { %v2127_v44 = vld [vmem:[%s2225_s28 + $0x60] sm:$0xff]   ;;  %v2129_v46 = vld [vmem:[%s2225_s28 + $0x68] sm:$0xff]   ;;  %v2132_v47 = vld [vmem:[%s2225_s28 + $0x70] sm:$0xff]  }
  0x1e   : > { %v2131_v48 = vld [vmem:[%s2225_s28 + $0x70] sm:$0xff]   ;;  %v2134_v49 = vld [vmem:[%s2225_s28 + $0x78] sm:$0xff]   ;;  %v2136_v51 = vld [vmem:[%s2225_s28 + $0x80] sm:$0xff]  }
  0x1f   : > { %v2133_v50 = vld [vmem:[%s2225_s28 + $0x78] sm:$0xff]   ;;  %v2135_v52 = vld [vmem:[%s2225_s28 + $0x80] sm:$0xff]   ;;  %v2137_v53 = vld [vmem:[%s2225_s28 + $0x88] sm:$0xff]  }
  0x22   : > { %1981 = vmatmul.mubr.msk.bf16.gmra.mxu1 %vm357_vm1, %v2099_v16 }
  0x23   : > { %1984 = vmatprep.mubr.msk.bf16.mxu1 %vm357_vm1, %v2102_v17  ;;  %1965 = vmatmul.mubr.msk.bf16.gmra.mxu0 %vm357_vm1, %v2101_v18 }
  0x24   : > { %1968 = vmatprep.mubr.msk.bf16.mxu0 %vm357_vm1, %v2104_v19 }
  0x2a   : > { %1985 = vmatmul.mubr.msk.bf16.gmra.mxu1 %vm357_vm1, %v2103_v20 }
  0x2b   : > { %1990 = vmatprep.mubr.msk.bf16.mxu1 %vm357_vm1, %v2106_v21  ;;  %1969 = vmatmul.mubr.msk.bf16.gmra.mxu0 %vm357_vm1, %v2105_v22 }
  0x2c   : > { %2024 = vmatprep.mubr.msk.bf16.mxu0 %vm357_vm1, %v2108_v23 }
  0x32   : > { %1991 = vmatmul.mubr.msk.bf16.vlgmr.msra.gmra.mxu1 %vm357_vm1, %v2107_v24 }
  0x33   : > { %1994 = vmatprep.mubr.msk.bf16.mxu1 %vm357_vm1, %v2110_v25  ;;  %2025 = vmatmul.mubr.msk.bf16.vlgmr.msra.gmra.mxu0 %vm357_vm1, %v2109_v26 }
  0x34   : > { %2028 = vmatprep.mubr.msk.bf16.mxu0 %vm357_vm1, %v2112_v27 }
  0x3a   : > { %1995 = vmatmul.mubr.msk.bf16.gmra.mxu1 %vm357_vm1, %v2111_v28 }
  0x3b   : > { %1998 = vmatprep.mubr.msk.bf16.mxu1 %vm357_vm1, %v2114_v29  ;;  %2029 = vmatmul.mubr.msk.bf16.gmra.mxu0 %vm357_vm1, %v2113_v30 }
  0x3c   : > { %2032 = vmatprep.mubr.msk.bf16.mxu0 %vm357_vm1, %v2116_v31 }
  0x42   : > { %1999 = vmatmul.mubr.msk.bf16.gmra.mxu1 %vm357_vm1, %v2115_v32 }
  0x43   : > { %2002 = vmatprep.mubr.msk.bf16.mxu1 %vm357_vm1, %v2118_v33  ;;  %2033 = vmatmul.mubr.msk.bf16.gmra.mxu0 %vm357_vm1, %v2117_v34 }
  0x44   : > { %2036 = vmatprep.mubr.msk.bf16.mxu0 %vm357_vm1, %v2120_v35 }
  0x4a   : > { %2003 = vmatmul.mubr.msk.bf16.gmra.mxu1 %vm357_vm1, %v2119_v36 }
  0x4b   : > { %2006 = vmatprep.mubr.msk.bf16.mxu1 %vm357_vm1, %v2122_v37  ;;  %2037 = vmatmul.mubr.msk.bf16.gmra.mxu0 %vm357_vm1, %v2121_v38 }
  0x4c   : > { %2040 = vmatprep.mubr.msk.bf16.mxu0 %vm357_vm1, %v2124_v39 }
  0x52   : > { %2007 = vmatmul.mubr.msk.bf16.gmra.mxu1 %vm357_vm1, %v2123_v40 }
  0x53   : > { %2010 = vmatprep.mubr.msk.bf16.mxu1 %vm357_vm1, %v2126_v41  ;;  %2041 = vmatmul.mubr.msk.bf16.gmra.mxu0 %vm357_vm1, %v2125_v42 }
  0x54   : > { %2044 = vmatprep.mubr.msk.bf16.mxu0 %vm357_vm1, %v2128_v43 }
  0x5a   : > { %2011 = vmatmul.mubr.msk.bf16.gmra.mxu1 %vm357_vm1, %v2127_v44 }
  0x5b   : > { %2014 = vmatprep.mubr.msk.bf16.mxu1 %vm357_vm1, %v2130_v45  ;;  %2045 = vmatmul.mubr.msk.bf16.gmra.mxu0 %vm357_vm1, %v2129_v46 }
  0x5c   : > { %2048 = vmatprep.mubr.msk.bf16.mxu0 %vm357_vm1, %v2132_v47 }
  0x62   : > { %2015 = vmatmul.mubr.msk.bf16.gmra.mxu1 %vm357_vm1, %v2131_v48 }
  0x63   : > { %2018 = vmatprep.mubr.msk.bf16.mxu1 %vm357_vm1, %v2134_v49  ;;  %2049 = vmatmul.mubr.msk.bf16.gmra.mxu0 %vm357_vm1, %v2133_v50 }
  0x64   : > { %2052 = vmatprep.mubr.msk.bf16.mxu0 %vm357_vm1, %v2136_v51 }
  0x6a   : > { %2019 = vmatmul.mubr.msk.bf16.gmra.mxu1 %vm357_vm1, %v2135_v52 }
  0x6b   : > { %2053 = vmatmul.mubr.msk.bf16.gmra.mxu0 %vm357_vm1, %v2137_v53 }
  0xd2   : > { %v1974_v54 = vpop.f32.mrf.mxu1 }
  0xd3   : > { %590 = vst.msk [vmem:[#allocation2 + $0x90] sm:$0xff] %vm571_vm2, %v1974_v54  ;;  %v1958_v56 = vpop.f32.mrf.mxu0 }
  0xd4   : > { %v508_v55 = vpop.f32.mrf.mxu1  ;;  %574 = vst.msk [vmem:[#allocation2 + $0x10] sm:$0xff] %vm571_vm2, %v1958_v56 }
  0xd5   : > { %588 = vst.msk [vmem:[#allocation2 + $0x80] sm:$0xff] %vm571_vm2, %v508_v55  ;;  %v444_v58 = vpop.f32.mrf.mxu0 }
  0xd6   : > { %v1975_v57 = vpop.f32.mrf.mxu1  ;;  %572 = vst.msk [vmem:[#allocation2] sm:$0xff] %vm571_vm2, %v444_v58 }
  0xd7   : > { %591 = vst.msk [vmem:[#allocation2 + $0x98] sm:$0xff] %vm571_vm2, %v1975_v57  ;;  %v1959_v60 = vpop.f32.mrf.mxu0 }
  0xd8   : > { %v511_v59 = vpop.f32.mrf.mxu1  ;;  %575 = vst.msk [vmem:[#allocation2 + $0x18] sm:$0xff] %vm571_vm2, %v1959_v60 }
  0xd9   : > { %589 = vst.msk [vmem:[#allocation2 + $0x88] sm:$0xff] %vm571_vm2, %v511_v59  ;;  %v447_v62 = vpop.f32.mrf.mxu0 }
  0xda   : > { %v1978_v61 = vpop.f32.mrf.mxu1  ;;  %573 = vst.msk [vmem:[#allocation2 + $0x8] sm:$0xff] %vm571_vm2, %v447_v62 }
  0xdb   : > { %594 = vst.msk [vmem:[#allocation2 + $0xb0] sm:$0xff] %vm571_vm2, %v1978_v61  ;;  %v1962_v0 = vpop.f32.mrf.mxu0  ;;  %v939_v22 = vld [vmem:[#allocation2 + $0x10] sm:$0xff] }
  0xdc   : > { %v524_v63 = vpop.f32.mrf.mxu1  ;;  %578 = vst.msk [vmem:[#allocation2 + $0x30] sm:$0xff] %vm571_vm2, %v1962_v0 }
  0xdd   : > { %592 = vst.msk [vmem:[#allocation2 + $0xa0] sm:$0xff] %vm571_vm2, %v524_v63  ;;  %v460_v2 = vpop.f32.mrf.mxu0  ;;  %v937_v26 = vld [vmem:[#allocation2] sm:$0xff] }
  0xde   : > { %v1979_v1 = vpop.f32.mrf.mxu1  ;;  %576 = vst.msk [vmem:[#allocation2 + $0x20] sm:$0xff] %vm571_vm2, %v460_v2 }
  0xdf   : > { %595 = vst.msk [vmem:[#allocation2 + $0xb8] sm:$0xff] %vm571_vm2, %v1979_v1  ;;  %v1963_v4 = vpop.f32.mrf.mxu0  ;;  %v940_v30 = vld [vmem:[#allocation2 + $0x18] sm:$0xff]  ;;  %v2371_v1 = vld [vmem:[%s2576_s2] ss:$0 sm:$0xff] }
  0xe0   : > { %v527_v3 = vpop.f32.mrf.mxu1  ;;  %579 = vst.msk [vmem:[#allocation2 + $0x38] sm:$0xff] %vm571_vm2, %v1963_v4 }
  0xe1   : > { %593 = vst.msk [vmem:[#allocation2 + $0xa8] sm:$0xff] %vm571_vm2, %v527_v3  ;;  %v463_v6 = vpop.f32.mrf.mxu0  ;;  %v938_v34 = vld [vmem:[#allocation2 + $0x8] sm:$0xff] }
  0xe2   : > { %v1982_v5 = vpop.f32.mrf.mxu1  ;;  %577 = vst.msk [vmem:[#allocation2 + $0x28] sm:$0xff] %vm571_vm2, %v463_v6  ;;  %v2376_v6 = vld [vmem:[%s2577_s3] ss:$0 sm:$0xff] }
  0xe3   : > { %598 = vst.msk [vmem:[#allocation2 + $0xd0] sm:$0xff] %vm571_vm2, %v1982_v5  ;;  %v1966_v8 = vpop.f32.mrf.mxu0  ;;  %v943_v38 = vld [vmem:[#allocation2 + $0x30] sm:$0xff] }
  0xe4   : > { %v540_v7 = vpop.f32.mrf.mxu1  ;;  %582 = vst.msk [vmem:[#allocation2 + $0x50] sm:$0xff] %vm571_vm2, %v1966_v8 }
  0xe5   : > { %596 = vst.msk [vmem:[#allocation2 + $0xc0] sm:$0xff] %vm571_vm2, %v540_v7  ;;  %v476_v10 = vpop.f32.mrf.mxu0  ;;  %v941_v43 = vld [vmem:[#allocation2 + $0x20] sm:$0xff] }
  0xe6   : > { %v1983_v9 = vpop.f32.mrf.mxu1  ;;  %580 = vst.msk [vmem:[#allocation2 + $0x40] sm:$0xff] %vm571_vm2, %v476_v10 }
  0xe7   : > { %599 = vst.msk [vmem:[#allocation2 + $0xd8] sm:$0xff] %vm571_vm2, %v1983_v9  ;;  %v1967_v12 = vpop.f32.mrf.mxu0  ;;  %v944_v49 = vld [vmem:[#allocation2 + $0x38] sm:$0xff] }
  0xe8   : > { %v543_v11 = vpop.f32.mrf.mxu1  ;;  %583 = vst.msk [vmem:[#allocation2 + $0x58] sm:$0xff] %vm571_vm2, %v1967_v12 }
  0xe9   : > { %597 = vst.msk [vmem:[#allocation2 + $0xc8] sm:$0xff] %vm571_vm2, %v543_v11  ;;  %v479_v14 = vpop.f32.mrf.mxu0  ;;  %v942_v55 = vld [vmem:[#allocation2 + $0x28] sm:$0xff] }
  0xea   : > { %v1986_v13 = vpop.f32.mrf.mxu1  ;;  %581 = vst.msk [vmem:[#allocation2 + $0x48] sm:$0xff] %vm571_vm2, %v479_v14 }
  0xeb   : > { %602 = vst.msk [vmem:[#allocation2 + $0xf0] sm:$0xff] %vm571_vm2, %v1986_v13  ;;  %v1970_v16 = vpop.f32.mrf.mxu0  ;;  %v947_v61 = vld [vmem:[#allocation2 + $0x50] sm:$0xff] }
  0xec   : > { %v556_v15 = vpop.f32.mrf.mxu1  ;;  %586 = vst.msk [vmem:[#allocation2 + $0x70] sm:$0xff] %vm571_vm2, %v1970_v16 }
  0xed   : > { %600 = vst.msk [vmem:[#allocation2 + $0xe0] sm:$0xff] %vm571_vm2, %v556_v15  ;;  %v492_v18 = vpop.f32.mrf.mxu0  ;;  %v945_v4 = vld [vmem:[#allocation2 + $0x40] sm:$0xff] }
  0xee   : > { %v1987_v17 = vpop.f32.mrf.mxu1  ;;  %584 = vst.msk [vmem:[#allocation2 + $0x60] sm:$0xff] %vm571_vm2, %v492_v18 }
  0xef   : > { %603 = vst.msk [vmem:[#allocation2 + $0xf8] sm:$0xff] %vm571_vm2, %v1987_v17  ;;  %v1971_v20 = vpop.f32.mrf.mxu0  ;;  %v948_v12 = vld [vmem:[#allocation2 + $0x58] sm:$0xff] }
  0xf0   : > { %v559_v19 = vpop.f32.mrf.mxu1  ;;  %587 = vst.msk [vmem:[#allocation2 + $0x78] sm:$0xff] %vm571_vm2, %v1971_v20 }
  0xf1   : > { %601 = vst.msk [vmem:[#allocation2 + $0xe8] sm:$0xff] %vm571_vm2, %v559_v19  ;;  %v495_v23 = vpop.f32.mrf.mxu0  ;;  %v946_v20 = vld [vmem:[#allocation2 + $0x48] sm:$0xff] }
  0xf2   : > { %v1992_v21 = vpop.f32.mrf.mxu1  ;;  %585 = vst.msk [vmem:[#allocation2 + $0x68] sm:$0xff] %vm571_vm2, %v495_v23 }
  0xf3   : > { %v971_v24 = vadd.f32 %v1992_v21, %v939_v22  ;;  %v2026_v27 = vpop.f32.mrf.mxu0 }
  0xf4   : > { %v810_v25 = vpop.f32.mrf.mxu1 }
  0xf5   : > { %1003 = vst.msk [vmem:[#allocation2 + $0x10] sm:$0xff] %vm571_vm2, %v971_v24  ;;  %v969_v28 = vadd.f32 %v937_v26, %v810_v25  ;;  %v1239_v31 = vpop.f32.mrf.mxu0 }
  0xf6   : > { %v1993_v29 = vpop.f32.mrf.mxu1 }
  0xf7   : > { %1001 = vst.msk [vmem:[#allocation2] sm:$0xff] %vm571_vm2, %v969_v28  ;;  %v972_v32 = vadd.f32 %v1993_v29, %v940_v30  ;;  %v2027_v35 = vpop.f32.mrf.mxu0 }
  0xf8   : > { %v813_v33 = vpop.f32.mrf.mxu1 }
  0xf9   : > { %1004 = vst.msk [vmem:[#allocation2 + $0x18] sm:$0xff] %vm571_vm2, %v972_v32  ;;  %v970_v36 = vadd.f32 %v938_v34, %v813_v33  ;;  %v1242_v39 = vpop.f32.mrf.mxu0  ;;  %v951_v34 = vld [vmem:[#allocation2 + $0x70] sm:$0xff] }
  0xfa   : > { %v1996_v37 = vpop.f32.mrf.mxu1 }
  0xfb   : > { %1002 = vst.msk [vmem:[#allocation2 + $0x8] sm:$0xff] %vm571_vm2, %v970_v36  ;;  %v975_v40 = vadd.f32 %v1996_v37, %v943_v38  ;;  %v2030_v44 = vpop.f32.mrf.mxu0 }
  0xfc   : > { %v1368_v41 = vld [vmem:[#allocation2 + $0x10] sm:$0xff]  ;;  %v826_v42 = vpop.f32.mrf.mxu1 }
  0xfd   : > { %v1400_v45 = vadd.f32 %v2026_v27, %v1368_v41  ;;  %1007 = vst.msk [vmem:[#allocation2 + $0x30] sm:$0xff] %vm571_vm2, %v975_v40  ;;  %v973_v46 = vadd.f32 %v941_v43, %v826_v42  ;;  %v1255_v50 = vpop.f32.mrf.mxu0 }
  0xfe   : > { %v1366_v47 = vld [vmem:[#allocation2] sm:$0xff]  ;;  %v1997_v48 = vpop.f32.mrf.mxu1 }
  0xff   : > { %1432 = vst.msk [vmem:[#allocation2 + $0x10] sm:$0xff] %vm571_vm2, %v1400_v45  ;;  %v1398_v51 = vadd.f32 %v1366_v47, %v1239_v31  ;;  %1005 = vst.msk [vmem:[#allocation2 + $0x20] sm:$0xff] %vm571_vm2, %v973_v46  ;;  %v976_v52 = vadd.f32 %v1997_v48, %v944_v49  ;;  %v2031_v56 = vpop.f32.mrf.mxu0 }
 0x100   : > { %v1369_v53 = vld [vmem:[#allocation2 + $0x18] sm:$0xff]  ;;  %v829_v54 = vpop.f32.mrf.mxu1 }
 0x101   : > { %1430 = vst.msk [vmem:[#allocation2] sm:$0xff] %vm571_vm2, %v1398_v51  ;;  %v1401_v57 = vadd.f32 %v2027_v35, %v1369_v53  ;;  %1008 = vst.msk [vmem:[#allocation2 + $0x38] sm:$0xff] %vm571_vm2, %v976_v52  ;;  %v974_v58 = vadd.f32 %v942_v55, %v829_v54  ;;  %v1258_v62 = vpop.f32.mrf.mxu0  ;;  %v952_v54 = vld [vmem:[#allocation2 + $0x78] sm:$0xff] }
 0x102   : > { %v1367_v59 = vld [vmem:[#allocation2 + $0x8] sm:$0xff]  ;;  %v2000_v60 = vpop.f32.mrf.mxu1 }
 0x103   : > { %1433 = vst.msk [vmem:[#allocation2 + $0x18] sm:$0xff] %vm571_vm2, %v1401_v57  ;;  %v1399_v63 = vadd.f32 %v1367_v59, %v1242_v39  ;;  %1006 = vst.msk [vmem:[#allocation2 + $0x28] sm:$0xff] %vm571_vm2, %v974_v58  ;;  %v979_v0 = vadd.f32 %v2000_v60, %v947_v61  ;;  %v2034_v5 = vpop.f32.mrf.mxu0 }
 0x104   : > { %v1372_v2 = vld [vmem:[#allocation2 + $0x30] sm:$0xff]  ;;  %v842_v3 = vpop.f32.mrf.mxu1 }
 0x105   : > { %1431 = vst.msk [vmem:[#allocation2 + $0x8] sm:$0xff] %vm571_vm2, %v1399_v63  ;;  %v1404_v7 = vadd.f32 %v2030_v44, %v1372_v2  ;;  %1011 = vst.msk [vmem:[#allocation2 + $0x50] sm:$0xff] %vm571_vm2, %v979_v0  ;;  %v977_v8 = vadd.f32 %v945_v4, %v842_v3  ;;  %v1271_v13 = vpop.f32.mrf.mxu0  ;;  %v949_v44 = vld [vmem:[#allocation2 + $0x60] sm:$0xff]  ;;  %v950_v0 = vld [vmem:[#allocation2 + $0x68] sm:$0xff] }
 0x106   : > { %v1464_v9 = vld [vmem:[#allocation2 + $0x10] sm:$0xff]  ;;  %v1370_v10 = vld [vmem:[#allocation2 + $0x20] sm:$0xff]  ;;  %v2001_v11 = vpop.f32.mrf.mxu1 }
 0x107   : > { %v1503_v14 = vmul.f32 %v2371_v1, %v1464_v9  ;;  %1436 = vst.msk [vmem:[#allocation2 + $0x30] sm:$0xff] %vm571_vm2, %v1404_v7  ;;  %v1402_v15 = vadd.f32 %v1370_v10, %v1255_v50  ;;  %1009 = vst.msk [vmem:[#allocation2 + $0x40] sm:$0xff] %vm571_vm2, %v977_v8  ;;  %v980_v16 = vadd.f32 %v2001_v11, %v948_v12  ;;  %v2035_v21 = vpop.f32.mrf.mxu0  ;;  %v955_v12 = vld [vmem:[#allocation2 + $0x90] sm:$0xff] }
 0x108   : > { %v1462_v17 = vld [vmem:[#allocation2] sm:$0xff]  ;;  %v1373_v18 = vld [vmem:[#allocation2 + $0x38] sm:$0xff]  ;;  %v845_v19 = vpop.f32.mrf.mxu1 }
 0x109   : > { %v1542_v22 = vadd.f32 %v2376_v6, %v1503_v14  ;;  %v1501_v23 = vmul.f32 %v2371_v1, %v1462_v17  ;;  %1434 = vst.msk [vmem:[#allocation2 + $0x20] sm:$0xff] %vm571_vm2, %v1402_v15  ;;  %v1405_v24 = vadd.f32 %v2031_v56, %v1373_v18  ;;  %1012 = vst.msk [vmem:[#allocation2 + $0x58] sm:$0xff] %vm571_vm2, %v980_v16  ;;  %v1274_v29 = vpop.f32.mrf.mxu0  ;;  %v953_v16 = vld [vmem:[#allocation2 + $0x80] sm:$0xff] }
 0x10a   : > { %v978_v25 = vadd.f32 %v946_v20, %v845_v19  ;;  %v1465_v26 = vld [vmem:[#allocation2 + $0x18] sm:$0xff]  ;;  %v1371_v27 = vld [vmem:[#allocation2 + $0x28] sm:$0xff]  ;;  %v2004_v28 = vpop.f32.mrf.mxu1 }
 0x10b   : > { %v1574_v30 = vmax.f32 %v1542_v22, 0.0  ;;  %v1540_v31 = vadd.f32 %v2376_v6, %v1501_v23  ;;  %v1504_v32 = vmul.f32 %v2371_v1, %v1465_v26  ;;  %1437 = vst.msk [vmem:[#allocation2 + $0x38] sm:$0xff] %vm571_vm2, %v1405_v24  ;;  %v1403_v33 = vadd.f32 %v1371_v27, %v1258_v62  ;;  %v2038_v39 = vpop.f32.mrf.mxu0  ;;  %v956_v26 = vld [vmem:[#allocation2 + $0x98] sm:$0xff] }
 0x10c   : > { %1010 = vst.msk [vmem:[#allocation2 + $0x48] sm:$0xff] %vm571_vm2, %v978_v25  ;;  %v1463_v35 = vld [vmem:[#allocation2 + $0x8] sm:$0xff]  ;;  %v1376_v36 = vld [vmem:[#allocation2 + $0x50] sm:$0xff]  ;;  %v983_v37 = vadd.f32 %v2004_v28, %v951_v34  ;;  %v858_v38 = vpop.f32.mrf.mxu1 }
 0x10d   : > { %1606 = vst.msk [vmem:[%s2391_s10 + $0x10] sm:$0xff] %vm571_vm2, %v1574_v30  ;;  %v1572_v40 = vmax.f32 %v1540_v31, 0.0  ;;  %v1543_v41 = vadd.f32 %v2376_v6, %v1504_v32  ;;  %v1502_v42 = vmul.f32 %v2371_v1, %v1463_v35  ;;  %1435 = vst.msk [vmem:[#allocation2 + $0x28] sm:$0xff] %vm571_vm2, %v1403_v33  ;;  %v1408_v43 = vadd.f32 %v2034_v5, %v1376_v36  ;;  %v1287_v49 = vpop.f32.mrf.mxu0  ;;  %v954_v36 = vld [vmem:[#allocation2 + $0x88] sm:$0xff] }
 0x10e   : > { %v1468_v45 = vld [vmem:[#allocation2 + $0x30] sm:$0xff]  ;;  %v1374_v46 = vld [vmem:[#allocation2 + $0x40] sm:$0xff]  ;;  %1015 = vst.msk [vmem:[#allocation2 + $0x70] sm:$0xff] %vm571_vm2, %v983_v37  ;;  %v981_v47 = vadd.f32 %v949_v44, %v858_v38  ;;  %v2005_v48 = vpop.f32.mrf.mxu1 }
 0x10f   : > { %1604 = vst.msk [vmem:[%s2391_s10] sm:$0xff] %vm571_vm2, %v1572_v40  ;;  %v1575_v50 = vmax.f32 %v1543_v41, 0.0  ;;  %v1541_v51 = vadd.f32 %v2376_v6, %v1502_v42  ;;  %v1507_v52 = vmul.f32 %v2371_v1, %v1468_v45  ;;  %1440 = vst.msk [vmem:[#allocation2 + $0x50] sm:$0xff] %vm571_vm2, %v1408_v43  ;;  %v1406_v53 = vadd.f32 %v1374_v46, %v1271_v13  ;;  %v2039_v59 = vpop.f32.mrf.mxu0  ;;  %v959_v46 = vld [vmem:[#allocation2 + $0xb0] sm:$0xff] }
 0x110   : > { %v1466_v55 = vld [vmem:[#allocation2 + $0x20] sm:$0xff]  ;;  %v1377_v56 = vld [vmem:[#allocation2 + $0x58] sm:$0xff]  ;;  %1013 = vst.msk [vmem:[#allocation2 + $0x60] sm:$0xff] %vm571_vm2, %v981_v47  ;;  %v984_v57 = vadd.f32 %v2005_v48, %v952_v54  ;;  %v861_v58 = vpop.f32.mrf.mxu1 }
 0x111   : > { %1607 = vst.msk [vmem:[%s2391_s10 + $0x18] sm:$0xff] %vm571_vm2, %v1575_v50  ;;  %v1573_v60 = vmax.f32 %v1541_v51, 0.0  ;;  %v1546_v61 = vadd.f32 %v2376_v6, %v1507_v52  ;;  %v1505_v62 = vmul.f32 %v2371_v1, %v1466_v55  ;;  %1438 = vst.msk [vmem:[#allocation2 + $0x40] sm:$0xff] %vm571_vm2, %v1406_v53  ;;  %v1409_v63 = vadd.f32 %v2035_v21, %v1377_v56  ;;  %v1290_v7 = vpop.f32.mrf.mxu0  ;;  %v957_v56 = vld [vmem:[#allocation2 + $0xa0] sm:$0xff] }
 0x112   : > { %v1469_v2 = vld [vmem:[#allocation2 + $0x38] sm:$0xff]  ;;  %1016 = vst.msk [vmem:[#allocation2 + $0x78] sm:$0xff] %vm571_vm2, %v984_v57  ;;  %v982_v4 = vadd.f32 %v950_v0, %v861_v58  ;;  %v2008_v5 = vpop.f32.mrf.mxu1 }
 0x113   : > { %v1375_v3 = vld [vmem:[#allocation2 + $0x48] sm:$0xff]  ;;  %1605 = vst.msk [vmem:[%s2391_s10 + $0x8] sm:$0xff] %vm571_vm2, %v1573_v60  ;;  %v1578_v8 = vmax.f32 %v1546_v61, 0.0  ;;  %v1544_v9 = vadd.f32 %v2376_v6, %v1505_v62  ;;  %v1508_v10 = vmul.f32 %v2371_v1, %v1469_v2  ;;  %1441 = vst.msk [vmem:[#allocation2 + $0x58] sm:$0xff] %vm571_vm2, %v1409_v63  ;;  %v987_v14 = vadd.f32 %v2008_v5, %v955_v12  ;;  %v2042_v17 = vpop.f32.mrf.mxu0 }
 0x114   : > { %v1407_v11 = vadd.f32 %v1375_v3, %v1274_v29  ;;  %v1467_v13 = vld [vmem:[#allocation2 + $0x28] sm:$0xff]  ;;  %1014 = vst.msk [vmem:[#allocation2 + $0x68] sm:$0xff] %vm571_vm2, %v982_v4  ;;  %v874_v15 = vpop.f32.mrf.mxu1  ;;  %v960_v3 = vld [vmem:[#allocation2 + $0xb8] sm:$0xff] }
 0x115   : > { %1610 = vst.msk [vmem:[%s2391_s10 + $0x30] sm:$0xff] %vm571_vm2, %v1578_v8  ;;  %v1576_v18 = vmax.f32 %v1544_v9, 0.0  ;;  %v1547_v19 = vadd.f32 %v2376_v6, %v1508_v10  ;;  %v1506_v20 = vmul.f32 %v2371_v1, %v1467_v13  ;;  %v1380_v21 = vld [vmem:[#allocation2 + $0x70] sm:$0xff]  ;;  %v985_v22 = vadd.f32 %v953_v16, %v874_v15  ;;  %1019 = vst.msk [vmem:[#allocation2 + $0x90] sm:$0xff] %vm571_vm2, %v987_v14  ;;  %v1303_v27 = vpop.f32.mrf.mxu0  ;;  %v958_v14 = vld [vmem:[#allocation2 + $0xa8] sm:$0xff] }
 0x116   : > { %1439 = vst.msk [vmem:[#allocation2 + $0x48] sm:$0xff] %vm571_vm2, %v1407_v11  ;;  %v1472_v23 = vld [vmem:[#allocation2 + $0x50] sm:$0xff]  ;;  %v1412_v24 = vadd.f32 %v2038_v39, %v1380_v21  ;;  %v2009_v25 = vpop.f32.mrf.mxu1 }
 0x117   : > { %1608 = vst.msk [vmem:[%s2391_s10 + $0x20] sm:$0xff] %vm571_vm2, %v1576_v18  ;;  %v1579_v28 = vmax.f32 %v1547_v19, 0.0  ;;  %v1545_v29 = vadd.f32 %v2376_v6, %v1506_v20  ;;  %v1511_v30 = vmul.f32 %v2371_v1, %v1472_v23  ;;  %v1378_v31 = vld [vmem:[#allocation2 + $0x60] sm:$0xff]  ;;  %1017 = vst.msk [vmem:[#allocation2 + $0x80] sm:$0xff] %vm571_vm2, %v985_v22  ;;  %v988_v32 = vadd.f32 %v2009_v25, %v956_v26  ;;  %v2043_v37 = vpop.f32.mrf.mxu0 }
 0x118   : > { %v1470_v33 = vld [vmem:[#allocation2 + $0x40] sm:$0xff]  ;;  %1444 = vst.msk [vmem:[#allocation2 + $0x70] sm:$0xff] %vm571_vm2, %v1412_v24  ;;  %v1410_v34 = vadd.f32 %v1378_v31, %v1287_v49  ;;  %v877_v35 = vpop.f32.mrf.mxu1  ;;  %v963_v24 = vld [vmem:[#allocation2 + $0xd0] sm:$0xff] }
 0x119   : > { %1611 = vst.msk [vmem:[%s2391_s10 + $0x38] sm:$0xff] %vm571_vm2, %v1579_v28  ;;  %v1577_v38 = vmax.f32 %v1545_v29, 0.0  ;;  %v1550_v39 = vadd.f32 %v2376_v6, %v1511_v30  ;;  %v1509_v40 = vmul.f32 %v2371_v1, %v1470_v33  ;;  %v1381_v41 = vld [vmem:[#allocation2 + $0x78] sm:$0xff]  ;;  %1020 = vst.msk [vmem:[#allocation2 + $0x98] sm:$0xff] %vm571_vm2, %v988_v32  ;;  %v986_v42 = vadd.f32 %v954_v36, %v877_v35  ;;  %v1306_v47 = vpop.f32.mrf.mxu0 }
 0x11a   : > { %v1473_v43 = vld [vmem:[#allocation2 + $0x58] sm:$0xff]  ;;  %1442 = vst.msk [vmem:[#allocation2 + $0x60] sm:$0xff] %vm571_vm2, %v1410_v34  ;;  %v1413_v44 = vadd.f32 %v2039_v59, %v1381_v41  ;;  %v2012_v45 = vpop.f32.mrf.mxu1  ;;  %v961_v34 = vld [vmem:[#allocation2 + $0xc0] sm:$0xff] }
 0x11b   : > { %1609 = vst.msk [vmem:[%s2391_s10 + $0x28] sm:$0xff] %vm571_vm2, %v1577_v38  ;;  %v1582_v48 = vmax.f32 %v1550_v39, 0.0  ;;  %v1548_v49 = vadd.f32 %v2376_v6, %v1509_v40  ;;  %v1512_v50 = vmul.f32 %v2371_v1, %v1473_v43  ;;  %v1379_v51 = vld [vmem:[#allocation2 + $0x68] sm:$0xff]  ;;  %1018 = vst.msk [vmem:[#allocation2 + $0x88] sm:$0xff] %vm571_vm2, %v986_v42  ;;  %v991_v52 = vadd.f32 %v2012_v45, %v959_v46  ;;  %v2046_v57 = vpop.f32.mrf.mxu0 }
 0x11c   : > { %1445 = vst.msk [vmem:[#allocation2 + $0x78] sm:$0xff] %vm571_vm2, %v1413_v44  ;;  %v1411_v54 = vadd.f32 %v1379_v51, %v1290_v7  ;;  %v890_v55 = vpop.f32.mrf.mxu1  ;;  %v1384_v61 = vld [vmem:[#allocation2 + $0x90] sm:$0xff]  ;;  %v964_v44 = vld [vmem:[#allocation2 + $0xd8] sm:$0xff] }
 0x11d   : > { %v1471_v53 = vld [vmem:[#allocation2 + $0x48] sm:$0xff]  ;;  %1614 = vst.msk [vmem:[%s2391_s10 + $0x50] sm:$0xff] %vm571_vm2, %v1582_v48  ;;  %v1580_v58 = vmax.f32 %v1548_v49, 0.0  ;;  %v1551_v59 = vadd.f32 %v2376_v6, %v1512_v50  ;;  %1023 = vst.msk [vmem:[#allocation2 + $0xb0] sm:$0xff] %vm571_vm2, %v991_v52  ;;  %v989_v62 = vadd.f32 %v957_v56, %v890_v55  ;;  %v1416_v63 = vadd.f32 %v2042_v17, %v1384_v61  ;;  %v1319_v4 = vpop.f32.mrf.mxu0 }
 0x11e   : > { %v1510_v60 = vmul.f32 %v2371_v1, %v1471_v53  ;;  %1443 = vst.msk [vmem:[#allocation2 + $0x68] sm:$0xff] %vm571_vm2, %v1411_v54  ;;  %v1382_v0 = vld [vmem:[#allocation2 + $0x80] sm:$0xff]  ;;  %v2013_v2 = vpop.f32.mrf.mxu1  ;;  %v962_v55 = vld [vmem:[#allocation2 + $0xc8] sm:$0xff] }
 0x11f   : > { %1612 = vst.msk [vmem:[%s2391_s10 + $0x40] sm:$0xff] %vm571_vm2, %v1580_v58  ;;  %v1583_v5 = vmax.f32 %v1551_v59, 0.0  ;;  %v1476_v8 = vld [vmem:[#allocation2 + $0x70] sm:$0xff]  ;;  %v1414_v9 = vadd.f32 %v1382_v0, %v1303_v27  ;;  %1021 = vst.msk [vmem:[#allocation2 + $0xa0] sm:$0xff] %vm571_vm2, %v989_v62  ;;  %v992_v10 = vadd.f32 %v2013_v2, %v960_v3  ;;  %v2047_v15 = vpop.f32.mrf.mxu0 }
 0x120   : > { %v1549_v7 = vadd.f32 %v2376_v6, %v1510_v60  ;;  %v1515_v11 = vmul.f32 %v2371_v1, %v1476_v8  ;;  %1448 = vst.msk [vmem:[#allocation2 + $0x90] sm:$0xff] %vm571_vm2, %v1416_v63  ;;  %v1385_v12 = vld [vmem:[#allocation2 + $0x98] sm:$0xff]  ;;  %v893_v13 = vpop.f32.mrf.mxu1  ;;  %v967_v2 = vld [vmem:[#allocation2 + $0xf0] sm:$0xff] }
 0x121   : > { %1615 = vst.msk [vmem:[%s2391_s10 + $0x58] sm:$0xff] %vm571_vm2, %v1583_v5  ;;  %v1474_v17 = vld [vmem:[#allocation2 + $0x60] sm:$0xff]  ;;  %1446 = vst.msk [vmem:[#allocation2 + $0x80] sm:$0xff] %vm571_vm2, %v1414_v9  ;;  %v1417_v18 = vadd.f32 %v2043_v37, %v1385_v12  ;;  %v990_v19 = vadd.f32 %v958_v14, %v893_v13  ;;  %v1322_v25 = vpop.f32.mrf.mxu0 }
 0x122   : > { %v1581_v16 = vmax.f32 %v1549_v7, 0.0  ;;  %1024 = vst.msk [vmem:[#allocation2 + $0xb8] sm:$0xff] %vm571_vm2, %v992_v10  ;;  %v1554_v20 = vadd.f32 %v2376_v6, %v1515_v11  ;;  %v1513_v21 = vmul.f32 %v2371_v1, %v1474_v17  ;;  %v1383_v22 = vld [vmem:[#allocation2 + $0x88] sm:$0xff]  ;;  %v2016_v23 = vpop.f32.mrf.mxu1  ;;  %v965_v17 = vld [vmem:[#allocation2 + $0xe0] sm:$0xff] }
 0x123   : > { %v1477_v26 = vld [vmem:[#allocation2 + $0x78] sm:$0xff]  ;;  %1449 = vst.msk [vmem:[#allocation2 + $0x98] sm:$0xff] %vm571_vm2, %v1417_v18  ;;  %v1415_v27 = vadd.f32 %v1383_v22, %v1306_v47  ;;  %1022 = vst.msk [vmem:[#allocation2 + $0xa8] sm:$0xff] %vm571_vm2, %v990_v19  ;;  %v995_v28 = vadd.f32 %v2016_v23, %v963_v24  ;;  %v2050_v35 = vpop.f32.mrf.mxu0 }
 0x124   : > { %1613 = vst.msk [vmem:[%s2391_s10 + $0x48] sm:$0xff] %vm571_vm2, %v1581_v16  ;;  %v1586_v29 = vmax.f32 %v1554_v20, 0.0  ;;  %v1552_v30 = vadd.f32 %v2376_v6, %v1513_v21  ;;  %v1516_v31 = vmul.f32 %v2371_v1, %v1477_v26  ;;  %v1388_v32 = vld [vmem:[#allocation2 + $0xb0] sm:$0xff]  ;;  %v906_v33 = vpop.f32.mrf.mxu1  ;;  %v968_v26 = vld [vmem:[#allocation2 + $0xf8] sm:$0xff] }
 0x125   : > { %v1475_v36 = vld [vmem:[#allocation2 + $0x68] sm:$0xff]  ;;  %1447 = vst.msk [vmem:[#allocation2 + $0x88] sm:$0xff] %vm571_vm2, %v1415_v27  ;;  %v1420_v37 = vadd.f32 %v2046_v57, %v1388_v32  ;;  %1027 = vst.msk [vmem:[#allocation2 + $0xd0] sm:$0xff] %vm571_vm2, %v995_v28  ;;  %v993_v38 = vadd.f32 %v961_v34, %v906_v33  ;;  %v1335_v45 = vpop.f32.mrf.mxu0 }
 0x126   : > { %1618 = vst.msk [vmem:[%s2391_s10 + $0x70] sm:$0xff] %vm571_vm2, %v1586_v29  ;;  %v1584_v39 = vmax.f32 %v1552_v30, 0.0  ;;  %v1555_v40 = vadd.f32 %v2376_v6, %v1516_v31  ;;  %v1514_v41 = vmul.f32 %v2371_v1, %v1475_v36  ;;  %v1386_v42 = vld [vmem:[#allocation2 + $0xa0] sm:$0xff]  ;;  %v2017_v43 = vpop.f32.mrf.mxu1  ;;  %v966_v36 = vld [vmem:[#allocation2 + $0xe8] sm:$0xff] }
 0x127   : > { %v1480_v46 = vld [vmem:[#allocation2 + $0x90] sm:$0xff]  ;;  %1452 = vst.msk [vmem:[#allocation2 + $0xb0] sm:$0xff] %vm571_vm2, %v1420_v37  ;;  %v1418_v47 = vadd.f32 %v1386_v42, %v1319_v4  ;;  %1025 = vst.msk [vmem:[#allocation2 + $0xc0] sm:$0xff] %vm571_vm2, %v993_v38  ;;  %v996_v48 = vadd.f32 %v2017_v43, %v964_v44  ;;  %v2051_v56 = vpop.f32.mrf.mxu0 }
 0x128   : > { %1616 = vst.msk [vmem:[%s2391_s10 + $0x60] sm:$0xff] %vm571_vm2, %v1584_v39  ;;  %v1587_v49 = vmax.f32 %v1555_v40, 0.0  ;;  %v1553_v50 = vadd.f32 %v2376_v6, %v1514_v41  ;;  %v1519_v51 = vmul.f32 %v2371_v1, %v1480_v46  ;;  %v1478_v52 = vld [vmem:[#allocation2 + $0x80] sm:$0xff]  ;;  %v909_v54 = vpop.f32.mrf.mxu1 }
 0x129   : > { %v1389_v53 = vld [vmem:[#allocation2 + $0xb8] sm:$0xff]  ;;  %v1517_v57 = vmul.f32 %v2371_v1, %v1478_v52  ;;  %1450 = vst.msk [vmem:[#allocation2 + $0xa0] sm:$0xff] %vm571_vm2, %v1418_v47  ;;  %1028 = vst.msk [vmem:[#allocation2 + $0xd8] sm:$0xff] %vm571_vm2, %v996_v48  ;;  %v994_v59 = vadd.f32 %v962_v55, %v909_v54  ;;  %v1338_v8 = vpop.f32.mrf.mxu0 }
 0x12a   : > { %v1421_v58 = vadd.f32 %v2047_v15, %v1389_v53  ;;  %1619 = vst.msk [vmem:[%s2391_s10 + $0x78] sm:$0xff] %vm571_vm2, %v1587_v49  ;;  %v1585_v60 = vmax.f32 %v1553_v50, 0.0  ;;  %v1558_v61 = vadd.f32 %v2376_v6, %v1519_v51  ;;  %v1481_v62 = vld [vmem:[#allocation2 + $0x98] sm:$0xff]  ;;  %v1387_v63 = vld [vmem:[#allocation2 + $0xa8] sm:$0xff]  ;;  %v2020_v0 = vpop.f32.mrf.mxu1 }
 0x12b   : > { %v1556_v3 = vadd.f32 %v2376_v6, %v1517_v57  ;;  %v1520_v4 = vmul.f32 %v2371_v1, %v1481_v62  ;;  %v1419_v5 = vadd.f32 %v1387_v63, %v1322_v25  ;;  %1026 = vst.msk [vmem:[#allocation2 + $0xc8] sm:$0xff] %vm571_vm2, %v994_v59  ;;  %v999_v7 = vadd.f32 %v2020_v0, %v967_v2  ;;  %v2054_v27 = vpop.f32.mrf.mxu0 }
 0x12c   : > { %1453 = vst.msk [vmem:[#allocation2 + $0xb8] sm:$0xff] %vm571_vm2, %v1421_v58  ;;  %1617 = vst.msk [vmem:[%s2391_s10 + $0x68] sm:$0xff] %vm571_vm2, %v1585_v60  ;;  %v1590_v9 = vmax.f32 %v1558_v61, 0.0  ;;  %v1479_v10 = vld [vmem:[#allocation2 + $0x88] sm:$0xff]  ;;  %v1392_v11 = vld [vmem:[#allocation2 + $0xd0] sm:$0xff]  ;;  %v922_v12 = vpop.f32.mrf.mxu1 }
 0x12d   : > { %v1588_v13 = vmax.f32 %v1556_v3, 0.0  ;;  %v1559_v14 = vadd.f32 %v2376_v6, %v1520_v4  ;;  %v1518_v15 = vmul.f32 %v2371_v1, %v1479_v10  ;;  %1451 = vst.msk [vmem:[#allocation2 + $0xa8] sm:$0xff] %vm571_vm2, %v1419_v5  ;;  %v1424_v16 = vadd.f32 %v2050_v35, %v1392_v11  ;;  %1031 = vst.msk [vmem:[#allocation2 + $0xf0] sm:$0xff] %vm571_vm2, %v999_v7  ;;  %v1351_v44 = vpop.f32.mrf.mxu0 }
 0x12e   : > { %1622 = vst.msk [vmem:[%s2391_s10 + $0x90] sm:$0xff] %vm571_vm2, %v1590_v9  ;;  %v1484_v18 = vld [vmem:[#allocation2 + $0xb0] sm:$0xff]  ;;  %v1390_v19 = vld [vmem:[#allocation2 + $0xc0] sm:$0xff]  ;;  %v997_v20 = vadd.f32 %v965_v17, %v922_v12  ;;  %v2021_v21 = vpop.f32.mrf.mxu1 }
 0x12f   : > { %1620 = vst.msk [vmem:[%s2391_s10 + $0x80] sm:$0xff] %vm571_vm2, %v1588_v13  ;;  %v1591_v22 = vmax.f32 %v1559_v14, 0.0  ;;  %v1557_v23 = vadd.f32 %v2376_v6, %v1518_v15  ;;  %v1523_v24 = vmul.f32 %v2371_v1, %v1484_v18  ;;  %1456 = vst.msk [vmem:[#allocation2 + $0xd0] sm:$0xff] %vm571_vm2, %v1424_v16  ;;  %v1422_v25 = vadd.f32 %v1390_v19, %v1335_v45 }
 0x130   : > { %v1482_v28 = vld [vmem:[#allocation2 + $0xa0] sm:$0xff]  ;;  %v1393_v29 = vld [vmem:[#allocation2 + $0xd8] sm:$0xff]  ;;  %1029 = vst.msk [vmem:[#allocation2 + $0xe0] sm:$0xff] %vm571_vm2, %v997_v20  ;;  %v1000_v30 = vadd.f32 %v2021_v21, %v968_v26  ;;  %v925_v31 = vpop.f32.mrf.mxu1 }
 0x131   : > { %1623 = vst.msk [vmem:[%s2391_s10 + $0x98] sm:$0xff] %vm571_vm2, %v1591_v22  ;;  %v1589_v32 = vmax.f32 %v1557_v23, 0.0  ;;  %v1562_v33 = vadd.f32 %v2376_v6, %v1523_v24  ;;  %v1521_v34 = vmul.f32 %v2371_v1, %v1482_v28  ;;  %1454 = vst.msk [vmem:[#allocation2 + $0xc0] sm:$0xff] %vm571_vm2, %v1422_v25  ;;  %v1425_v35 = vadd.f32 %v2051_v56, %v1393_v29  ;;  %v2055_v56 = vpop.f32.mrf.mxu0 }
 0x132   : > { %v1391_v38 = vld [vmem:[#allocation2 + $0xc8] sm:$0xff]  ;;  %1032 = vst.msk [vmem:[#allocation2 + $0xf8] sm:$0xff] %vm571_vm2, %v1000_v30  ;;  %v998_v39 = vadd.f32 %v966_v36, %v925_v31 }
 0x133   : > { %v1485_v37 = vld [vmem:[#allocation2 + $0xb8] sm:$0xff]  ;;  %1621 = vst.msk [vmem:[%s2391_s10 + $0x88] sm:$0xff] %vm571_vm2, %v1589_v32  ;;  %v1594_v40 = vmax.f32 %v1562_v33, 0.0  ;;  %v1560_v41 = vadd.f32 %v2376_v6, %v1521_v34  ;;  %1457 = vst.msk [vmem:[#allocation2 + $0xd8] sm:$0xff] %vm571_vm2, %v1425_v35  ;;  %v1423_v43 = vadd.f32 %v1391_v38, %v1338_v8  ;;  %v1354_v5 = vpop.f32.mrf.mxu0 }
 0x134   : > { %v1524_v42 = vmul.f32 %v2371_v1, %v1485_v37  ;;  %v1483_v45 = vld [vmem:[#allocation2 + $0xa8] sm:$0xff]  ;;  %v1396_v46 = vld [vmem:[#allocation2 + $0xf0] sm:$0xff]  ;;  %1030 = vst.msk [vmem:[#allocation2 + $0xe8] sm:$0xff] %vm571_vm2, %v998_v39 }
 0x135   : > { %1626 = vst.msk [vmem:[%s2391_s10 + $0xb0] sm:$0xff] %vm571_vm2, %v1594_v40  ;;  %v1592_v47 = vmax.f32 %v1560_v41, 0.0  ;;  %v1522_v49 = vmul.f32 %v2371_v1, %v1483_v45  ;;  %1455 = vst.msk [vmem:[#allocation2 + $0xc8] sm:$0xff] %vm571_vm2, %v1423_v43  ;;  %v1428_v50 = vadd.f32 %v2054_v27, %v1396_v46 }
 0x136   : > { %v1563_v48 = vadd.f32 %v2376_v6, %v1524_v42  ;;  %v1488_v51 = vld [vmem:[#allocation2 + $0xd0] sm:$0xff] }
 0x137   : > { %1624 = vst.msk [vmem:[%s2391_s10 + $0xa0] sm:$0xff] %vm571_vm2, %v1592_v47  ;;  %v1561_v53 = vadd.f32 %v2376_v6, %v1522_v49  ;;  %v1527_v54 = vmul.f32 %v2371_v1, %v1488_v51  ;;  %1460 = vst.msk [vmem:[#allocation2 + $0xf0] sm:$0xff] %vm571_vm2, %v1428_v50  ;;  %v1394_v55 = vld [vmem:[#allocation2 + $0xe0] sm:$0xff] }
 0x138   : > { %v1595_v52 = vmax.f32 %v1563_v48, 0.0  ;;  %v1486_v57 = vld [vmem:[#allocation2 + $0xc0] sm:$0xff]  ;;  %v1426_v58 = vadd.f32 %v1394_v55, %v1351_v44 }
 0x139   : > { %v1593_v59 = vmax.f32 %v1561_v53, 0.0  ;;  %v1566_v60 = vadd.f32 %v2376_v6, %v1527_v54  ;;  %v1525_v61 = vmul.f32 %v2371_v1, %v1486_v57  ;;  %v1397_v62 = vld [vmem:[#allocation2 + $0xf8] sm:$0xff] }
 0x13a   : > { %1627 = vst.msk [vmem:[%s2391_s10 + $0xb8] sm:$0xff] %vm571_vm2, %v1595_v52  ;;  %v1489_v63 = vld [vmem:[#allocation2 + $0xd8] sm:$0xff]  ;;  %1458 = vst.msk [vmem:[#allocation2 + $0xe0] sm:$0xff] %vm571_vm2, %v1426_v58  ;;  %v1429_v0 = vadd.f32 %v2055_v56, %v1397_v62 }
 0x13b   : > { %1625 = vst.msk [vmem:[%s2391_s10 + $0xa8] sm:$0xff] %vm571_vm2, %v1593_v59  ;;  %v1598_v2 = vmax.f32 %v1566_v60, 0.0  ;;  %v1564_v3 = vadd.f32 %v2376_v6, %v1525_v61  ;;  %v1528_v4 = vmul.f32 %v2371_v1, %v1489_v63  ;;  %v1395_v7 = vld [vmem:[#allocation2 + $0xe8] sm:$0xff] }
 0x13c   : > { %v1487_v8 = vld [vmem:[#allocation2 + $0xc8] sm:$0xff]  ;;  %1461 = vst.msk [vmem:[#allocation2 + $0xf8] sm:$0xff] %vm571_vm2, %v1429_v0  ;;  %v1427_v9 = vadd.f32 %v1395_v7, %v1354_v5 }
 0x13d   : > { %1630 = vst.msk [vmem:[%s2391_s10 + $0xd0] sm:$0xff] %vm571_vm2, %v1598_v2  ;;  %v1596_v10 = vmax.f32 %v1564_v3, 0.0  ;;  %v1567_v11 = vadd.f32 %v2376_v6, %v1528_v4  ;;  %v1526_v12 = vmul.f32 %v2371_v1, %v1487_v8 }
 0x13e   : > { %v1492_v13 = vld [vmem:[#allocation2 + $0xf0] sm:$0xff]  ;;  %1459 = vst.msk [vmem:[#allocation2 + $0xe8] sm:$0xff] %vm571_vm2, %v1427_v9 }
 0x13f   : > { %1628 = vst.msk [vmem:[%s2391_s10 + $0xc0] sm:$0xff] %vm571_vm2, %v1596_v10  ;;  %v1599_v14 = vmax.f32 %v1567_v11, 0.0  ;;  %v1565_v15 = vadd.f32 %v2376_v6, %v1526_v12  ;;  %v1531_v16 = vmul.f32 %v2371_v1, %v1492_v13 }
 0x141   : > { %1631 = vst.msk [vmem:[%s2391_s10 + $0xd8] sm:$0xff] %vm571_vm2, %v1599_v14  ;;  %v1597_v17 = vmax.f32 %v1565_v15, 0.0  ;;  %v1570_v18 = vadd.f32 %v2376_v6, %v1531_v16  ;;  %v1490_v19 = vld [vmem:[#allocation2 + $0xe0] sm:$0xff] }
 0x142   : > { %v1529_v20 = vmul.f32 %v2371_v1, %v1490_v19 }
 0x143   : > { %1629 = vst.msk [vmem:[%s2391_s10 + $0xc8] sm:$0xff] %vm571_vm2, %v1597_v17  ;;  %v1602_v21 = vmax.f32 %v1570_v18, 0.0  ;;  %v1493_v22 = vld [vmem:[#allocation2 + $0xf8] sm:$0xff] }
 0x144   : > { %v1568_v23 = vadd.f32 %v2376_v6, %v1529_v20  ;;  %v1532_v24 = vmul.f32 %v2371_v1, %v1493_v22 }
 0x145   : > { %1634 = vst.msk [vmem:[%s2391_s10 + $0xf0] sm:$0xff] %vm571_vm2, %v1602_v21  ;;  %v1491_v25 = vld [vmem:[#allocation2 + $0xe8] sm:$0xff] }
 0x146   : > { %v1600_v26 = vmax.f32 %v1568_v23, 0.0  ;;  %v1571_v27 = vadd.f32 %v2376_v6, %v1532_v24  ;;  %v1530_v28 = vmul.f32 %v2371_v1, %v1491_v25 }
 0x148   : > { %1632 = vst.msk [vmem:[%s2391_s10 + $0xe0] sm:$0xff] %vm571_vm2, %v1600_v26  ;;  %v1603_v29 = vmax.f32 %v1571_v27, 0.0  ;;  %v1569_v30 = vadd.f32 %v2376_v6, %v1530_v28 }
 0x14a   : > { %1635 = vst.msk [vmem:[%s2391_s10 + $0xf8] sm:$0xff] %vm571_vm2, %v1603_v29  ;;  %v1601_v31 = vmax.f32 %v1569_v30, 0.0 }
 0x14c   : > { %1633 = vst.msk [vmem:[%s2391_s10 + $0xe8] sm:$0xff] %vm571_vm2, %v1601_v31 }
 0x14d PF: > { %s14_s17 = sadd.s32 1, %s2160_s17   ;;  %s2579_s15 = smov %s2156_s16 }
 0x14e   : > { %p11_p5 = scmp.ge.s32.totalorder %s14_s17, 4   ;;  %s2580_s16 = smov %s2582_s18 }
 0x150   :  { %13 = sbr.rel (!%p11_p5) target bundleno = 2 (0x2), region = 70 }

// kernel: double_conv.3
= control target key start
LH: loop header
LB: loop body
LE: loop exit
PB: predicated region body
PF: predicated region fallthrough
CT: control target
= control target key end

     0   :  { %s2221_s15 = smov 0   ;;  %s2223_s16 = smov 0   ;;  %s2617_s0 = inlined_call_operand.vmem [shape: bf16[2,18,16,24], index: 0, kind: input, shape index: {}]   ;;  %s2618_s1 = inlined_call_operand.vmem [shape: bf16[3,24,8], index: 1, kind: input, shape index: {}]   ;;  %s2619_s2 = inlined_call_operand.vmem [shape: f32[1,8], index: 2, kind: input, shape index: {}]   ;;  %s2620_s3 = inlined_call_operand.vmem [shape: f32[1,8], index: 3, kind: input, shape index: {}]   ;;  %s2621_s4 = inlined_call_operand.vmem [shape: f32[2,16,16,8], index: 4, kind: output, shape index: {}]  }
   0x1   :  { %s2225_s17 = smov 0  }
   0x2 LB: > { %s26_s18 = sadd.s32 1, %s2190_s16  ;;  %p1742_p0 = scmp.ge.s32.totalorder %s2194_s17, 1  ;;  %s2194_s17 = sphi %s2225_s17, %s14_s17   ;;  %s2190_s16 = sphi %s2223_s16, %s2623_s16   ;;  %s2186_s15 = sphi %s2221_s15, %s2622_s15  }
   0x3   : > { %p28_p1 = scmp.ge.s32.totalorder %s26_s18, 2  ;;  %p183_p2 = scmp.lt.s32.totalorder %s2194_s17, 3 }
   0x5   : > { %s2625_s18 = smov (%p28_p1, %s26_s18), 0  ;;  %p184_p3 = pnand %p1742_p0, %p183_p2 }
   0x6   : > { %p218_p4 = scmp.lt.s32.totalorder (!%p184_p3), %s2186_s15, 1 }
   0x7   : > { %187 = sbr.rel (%p184_p3) target bundleno = 336 (0x150), region = 36 }
   0xc   : > { %v2118_v0 = vld [vmem:[%s2618_s1 + $0x8] ss:$0 sps:$4 sm:$0xff]   ;;  %vm411_vm0 = vcmask 1043456   ;;  %v2119_v1 = vld [vmem:[%s2618_s1] sm:$0xff]   ;;  %s2627_s15 = smov (!%p218_p4, %s2186_s15), 1  ;;  %vm362_vm1 = vcmask 195584  }
   0xd   : > { %2090 = vmatprep.subr.msk.bf16.mxu1 %vm411_vm0, %v2118_v0  ;;  %v413_v2 = vsel %vm411_vm0, %v2118_v0, 0  ;;  %2089 = vmatprep.subr.msk.bf16.mxu0 %vm411_vm0, %v2118_v0  ;;  %v2122_v3 = vld [vmem:[%s2618_s1 + $0x14] ss:$0 sps:$4 sm:$0xff]   ;;  %v2127_v4 = vld [vmem:[%s2618_s1 + $0x20] ss:$0 sps:$4 sm:$0xff]   ;;  %s2093_s27 = smul.u32 144, %s2627_s15 }
   0xe   : > { %2087 = vmatpush3.bf16.msra.mxu1 %v413_v2  ;;  %1978 = vmatpush3.bf16.msra.mxu0 %v413_v2  ;;  %v2132_v5 = vld [vmem:[%s2618_s1 + $0xc] sm:$0xff]   ;;  %v784_v8 = vsel %vm411_vm0, %v2122_v3, 0  ;;  %v2137_v9 = vld [vmem:[%s2618_s1 + $0x18] sm:$0xff]   ;;  %v1218_v12 = vsel %vm411_vm0, %v2127_v4, 0  ;;  %vm576_vm2 = vcmask 64512   ;;  %s1922_s13 = sshll.u32 %s2627_s15, 8 }
   0xf   : > { %2086 = vmatprep.subr.bf16.mxu1 %v2119_v1  ;;  %1979 = vmatprep.subr.bf16.mxu0 %v2119_v1  ;;  %s2260_s30 = scalar_lea.vmem %s2617_s0, %s2093_s27  ;;  %s2434_s19 = scalar_lea.vmem %s2621_s4, %s1922_s13 }
  0x10   : > { %v2120_v6 = vld [vmem:[%s2260_s30 + $0x40] sm:$0xff]   ;;  %v2121_v7 = vld [vmem:[%s2260_s30 + $0x48] sm:$0xff]   ;;  %v2125_v13 = vld [vmem:[%s2260_s30 + $0x50] sm:$0xff]  }
  0x11   : > { %1997 = vmatprep.mubr.msk.bf16.mxu1 %vm362_vm1, %v2120_v6  ;;  %v2123_v10 = vld [vmem:[%s2260_s30] sm:$0xff]   ;;  %v2124_v11 = vld [vmem:[%s2260_s30 + $0x8] sm:$0xff]   ;;  %v2128_v14 = vld [vmem:[%s2260_s30 + $0x10] sm:$0xff]  }
  0x12   : > { %2088 = vmatpush3.bf16.msra.mxu1 %v2119_v1  ;;  %1980 = vmatpush3.bf16.msra.mxu0 %v2119_v1  ;;  %v2126_v15 = vld [vmem:[%s2260_s30 + $0x58] sm:$0xff]   ;;  %v2130_v16 = vld [vmem:[%s2260_s30 + $0x60] sm:$0xff]   ;;  %v2131_v19 = vld [vmem:[%s2260_s30 + $0x68] sm:$0xff]  }
  0x13   : > { %2091 = vmatprep.subr.msk.bf16.mxu1 %vm411_vm0, %v2122_v3  ;;  %2092 = vmatprep.subr.msk.bf16.mxu0 %vm411_vm0, %v2127_v4  ;;  %v2129_v17 = vld [vmem:[%s2260_s30 + $0x18] sm:$0xff]   ;;  %v2133_v18 = vld [vmem:[%s2260_s30 + $0x20] sm:$0xff]   ;;  %v2135_v20 = vld [vmem:[%s2260_s30 + $0x70] sm:$0xff]  }
  0x14   : > { %1981 = vmatprep.mubr.msk.bf16.mxu0 %vm362_vm1, %v2123_v10  ;;  %v2134_v21 = vld [vmem:[%s2260_s30 + $0x28] sm:$0xff]   ;;  %v2138_v22 = vld [vmem:[%s2260_s30 + $0x30] sm:$0xff]   ;;  %v2136_v23 = vld [vmem:[%s2260_s30 + $0x78] sm:$0xff]  }
  0x15   : > { %1998 = vmatmul.mubr.msk.bf16.vlgmr.msra.gmra.mxu1 %vm362_vm1, %v2121_v7  ;;  %1982 = vmatmul.mubr.msk.bf16.vlgmr.msra.gmra.mxu0 %vm362_vm1, %v2124_v11  ;;  %v2140_v24 = vld [vmem:[%s2260_s30 + $0x8] sm:$0xff]   ;;  %v2139_v25 = vld [vmem:[%s2260_s30 + $0x38] sm:$0xff]   ;;  %v2142_v26 = vld [vmem:[%s2260_s30 + $0x10] sm:$0xff]  }
  0x16   : > { %2014 = vmatpush3.bf16.msra.mxu1 %v784_v8  ;;  %2001 = vmatprep.mubr.msk.bf16.mxu1 %vm362_vm1, %v2125_v13  ;;  %v2141_v27 = vld [vmem:[%s2260_s30 + $0x10] sm:$0xff]   ;;  %v2144_v28 = vld [vmem:[%s2260_s30 + $0x18] sm:$0xff]   ;;  %v2146_v30 = vld [vmem:[%s2260_s30 + $0x20] sm:$0xff]  }
  0x17   : > { %2015 = vmatprep.subr.bf16.mxu1 %v2132_v5  ;;  %2050 = vmatpush3.bf16.msra.mxu0 %v1218_v12  ;;  %v2143_v29 = vld [vmem:[%s2260_s30 + $0x18] sm:$0xff]   ;;  %v2145_v31 = vld [vmem:[%s2260_s30 + $0x20] sm:$0xff]   ;;  %v2148_v32 = vld [vmem:[%s2260_s30 + $0x28] sm:$0xff]  }
  0x18   : > { %2051 = vmatprep.subr.bf16.mxu0 %v2137_v9  ;;  %1985 = vmatprep.mubr.msk.bf16.mxu0 %vm362_vm1, %v2128_v14  ;;  %v2147_v33 = vld [vmem:[%s2260_s30 + $0x28] sm:$0xff]   ;;  %v2150_v34 = vld [vmem:[%s2260_s30 + $0x30] sm:$0xff]   ;;  %v2152_v36 = vld [vmem:[%s2260_s30 + $0x38] sm:$0xff]  }
  0x19   : > { %v2149_v35 = vld [vmem:[%s2260_s30 + $0x30] sm:$0xff]   ;;  %v2151_v37 = vld [vmem:[%s2260_s30 + $0x38] sm:$0xff]   ;;  %v2154_v38 = vld [vmem:[%s2260_s30 + $0x40] sm:$0xff]  }
  0x1a   : > { %2016 = vmatpush3.bf16.msra.mxu1 %v2132_v5  ;;  %v2153_v39 = vld [vmem:[%s2260_s30 + $0x40] sm:$0xff]   ;;  %v2156_v40 = vld [vmem:[%s2260_s30 + $0x48] sm:$0xff]   ;;  %v2158_v42 = vld [vmem:[%s2260_s30 + $0x50] sm:$0xff]  }
  0x1b   : > { %2052 = vmatpush3.bf16.msra.mxu0 %v2137_v9  ;;  %v2155_v41 = vld [vmem:[%s2260_s30 + $0x48] sm:$0xff]   ;;  %v2157_v43 = vld [vmem:[%s2260_s30 + $0x50] sm:$0xff]   ;;  %v2160_v44 = vld [vmem:[%s2260_s30 + $0x58] sm:$0xff]  }
  0x1c   : > { %v2159_v45 = vld [vmem:[%s2260_s30 + $0x58] sm:$0xff]   ;;  %v2162_v46 = vld [vmem:[%s2260_s30 + $0x60] sm:$0xff]   ;;  %v2164_v48 = vld [vmem:[%s2260_s30 + $0x68] sm:$0xff]  }
  0x1d   : > { %2002 = vmatmul.mubr.msk.bf16.gmra.mxu1 %vm362_vm1, %v2126_v15  ;;  %1986 = vmatmul.mubr.msk.bf16.gmra.mxu0 %vm362_vm1, %v2129_v17  ;;  %v2161_v47 = vld [vmem:[%s2260_s30 + $0x60] sm:$0xff]   ;;  %v2163_v49 = vld [vmem:[%s2260_s30 + $0x68] sm:$0xff]   ;;  %v2166_v50 = vld [vmem:[%s2260_s30 + $0x70] sm:$0xff]  }
  0x1e   : > { %2005 = vmatprep.mubr.msk.bf16.mxu1 %vm362_vm1, %v2130_v16  ;;  %1989 = vmatprep.mubr.msk.bf16.mxu0 %vm362_vm1, %v2133_v18  ;;  %v2165_v51 = vld [vmem:[%s2260_s30 + $0x70] sm:$0xff]   ;;  %v2168_v52 = vld [vmem:[%s2260_s30 + $0x78] sm:$0xff]   ;;  %v2170_v54 = vld [vmem:[%s2260_s30 + $0x80] sm:$0xff]  }
  0x1f   : > { %v2167_v53 = vld [vmem:[%s2260_s30 + $0x78] sm:$0xff]   ;;  %v2169_v55 = vld [vmem:[%s2260_s30 + $0x80] sm:$0xff]   ;;  %v2171_v56 = vld [vmem:[%s2260_s30 + $0x88] sm:$0xff]  }
  0x25   : > { %2006 = vmatmul.mubr.msk.bf16.gmra.mxu1 %vm362_vm1, %v2131_v19  ;;  %1990 = vmatmul.mubr.msk.bf16.gmra.mxu0 %vm362_vm1, %v2134_v21 }
  0x26   : > { %2009 = vmatprep.mubr.msk.bf16.mxu1 %vm362_vm1, %v2135_v20  ;;  %1993 = vmatprep.mubr.msk.bf16.mxu0 %vm362_vm1, %v2138_v22 }
  0x2d   : > { %2010 = vmatmul.mubr.msk.bf16.gmra.mxu1 %vm362_vm1, %v2136_v23  ;;  %1994 = vmatmul.mubr.msk.bf16.gmra.mxu0 %vm362_vm1, %v2139_v25 }
  0x2e   : > { %2017 = vmatprep.mubr.msk.bf16.mxu1 %vm362_vm1, %v2140_v24  ;;  %2053 = vmatprep.mubr.msk.bf16.mxu0 %vm362_vm1, %v2142_v26 }
  0x35   : > { %2018 = vmatmul.mubr.msk.bf16.vlgmr.msra.gmra.mxu1 %vm362_vm1, %v2141_v27  ;;  %2054 = vmatmul.mubr.msk.bf16.vlgmr.msra.gmra.mxu0 %vm362_vm1, %v2143_v29 }
  0x36   : > { %2021 = vmatprep.mubr.msk.bf16.mxu1 %vm362_vm1, %v2144_v28  ;;  %2057 = vmatprep.mubr.msk.bf16.mxu0 %vm362_vm1, %v2146_v30 }
  0x3d   : > { %2022 = vmatmul.mubr.msk.bf16.gmra.mxu1 %vm362_vm1, %v2145_v31  ;;  %2058 = vmatmul.mubr.msk.bf16.gmra.mxu0 %vm362_vm1, %v2147_v33 }
  0x3e   : > { %2025 = vmatprep.mubr.msk.bf16.mxu1 %vm362_vm1, %v2148_v32  ;;  %2061 = vmatprep.mubr.msk.bf16.mxu0 %vm362_vm1, %v2150_v34 }
  0x45   : > { %2026 = vmatmul.mubr.msk.bf16.gmra.mxu1 %vm362_vm1, %v2149_v35  ;;  %2062 = vmatmul.mubr.msk.bf16.gmra.mxu0 %vm362_vm1, %v2151_v37 }
  0x46   : > { %2029 = vmatprep.mubr.msk.bf16.mxu1 %vm362_vm1, %v2152_v36  ;;  %2065 = vmatprep.mubr.msk.bf16.mxu0 %vm362_vm1, %v2154_v38 }
  0x4d   : > { %2030 = vmatmul.mubr.msk.bf16.gmra.mxu1 %vm362_vm1, %v2153_v39  ;;  %2066 = vmatmul.mubr.msk.bf16.gmra.mxu0 %vm362_vm1, %v2155_v41 }
  0x4e   : > { %2033 = vmatprep.mubr.msk.bf16.mxu1 %vm362_vm1, %v2156_v40  ;;  %2069 = vmatprep.mubr.msk.bf16.mxu0 %vm362_vm1, %v2158_v42 }
  0x55   : > { %2034 = vmatmul.mubr.msk.bf16.gmra.mxu1 %vm362_vm1, %v2157_v43  ;;  %2070 = vmatmul.mubr.msk.bf16.gmra.mxu0 %vm362_vm1, %v2159_v45 }
  0x56   : > { %2037 = vmatprep.mubr.msk.bf16.mxu1 %vm362_vm1, %v2160_v44  ;;  %2073 = vmatprep.mubr.msk.bf16.mxu0 %vm362_vm1, %v2162_v46 }
  0x5d   : > { %2038 = vmatmul.mubr.msk.bf16.gmra.mxu1 %vm362_vm1, %v2161_v47  ;;  %2074 = vmatmul.mubr.msk.bf16.gmra.mxu0 %vm362_vm1, %v2163_v49 }
  0x5e   : > { %2041 = vmatprep.mubr.msk.bf16.mxu1 %vm362_vm1, %v2164_v48  ;;  %2077 = vmatprep.mubr.msk.bf16.mxu0 %vm362_vm1, %v2166_v50 }
  0x65   : > { %2042 = vmatmul.mubr.msk.bf16.gmra.mxu1 %vm362_vm1, %v2165_v51  ;;  %2078 = vmatmul.mubr.msk.bf16.gmra.mxu0 %vm362_vm1, %v2167_v53 }
  0x66   : > { %2045 = vmatprep.mubr.msk.bf16.mxu1 %vm362_vm1, %v2168_v52  ;;  %2081 = vmatprep.mubr.msk.bf16.mxu0 %vm362_vm1, %v2170_v54 }
  0x6d   : > { %2046 = vmatmul.mubr.msk.bf16.gmra.mxu1 %vm362_vm1, %v2169_v55  ;;  %2082 = vmatmul.mubr.msk.bf16.gmra.mxu0 %vm362_vm1, %v2171_v56 }
  0xd5   : > { %v1999_v57 = vpop.f32.mrf.mxu1  ;;  %v1983_v59 = vpop.f32.mrf.mxu0 }
  0xd6   : > { %595 = vst.msk [vmem:[#allocation2 + $0x90] sm:$0xff] %vm576_vm2, %v1999_v57  ;;  %579 = vst.msk [vmem:[#allocation2 + $0x10] sm:$0xff] %vm576_vm2, %v1983_v59 }
  0xd7   : > { %v513_v58 = vpop.f32.mrf.mxu1  ;;  %v449_v61 = vpop.f32.mrf.mxu0 }
  0xd8   : > { %593 = vst.msk [vmem:[#allocation2 + $0x80] sm:$0xff] %vm576_vm2, %v513_v58  ;;  %577 = vst.msk [vmem:[#allocation2] sm:$0xff] %vm576_vm2, %v449_v61 }
  0xd9   : > { %v2000_v60 = vpop.f32.mrf.mxu1  ;;  %v1984_v63 = vpop.f32.mrf.mxu0 }
  0xda   : > { %596 = vst.msk [vmem:[#allocation2 + $0x98] sm:$0xff] %vm576_vm2, %v2000_v60  ;;  %580 = vst.msk [vmem:[#allocation2 + $0x18] sm:$0xff] %vm576_vm2, %v1984_v63 }
  0xdb   : > { %v516_v62 = vpop.f32.mrf.mxu1  ;;  %v452_v1 = vpop.f32.mrf.mxu0 }
  0xdc   : > { %594 = vst.msk [vmem:[#allocation2 + $0x88] sm:$0xff] %vm576_vm2, %v516_v62  ;;  %578 = vst.msk [vmem:[#allocation2 + $0x8] sm:$0xff] %vm576_vm2, %v452_v1 }
  0xdd   : > { %v2003_v0 = vpop.f32.mrf.mxu1  ;;  %v1987_v3 = vpop.f32.mrf.mxu0  ;;  %v949_v25 = vld [vmem:[#allocation2 + $0x10] sm:$0xff] }
  0xde   : > { %599 = vst.msk [vmem:[#allocation2 + $0xb0] sm:$0xff] %vm576_vm2, %v2003_v0  ;;  %583 = vst.msk [vmem:[#allocation2 + $0x30] sm:$0xff] %vm576_vm2, %v1987_v3 }
  0xdf   : > { %v529_v2 = vpop.f32.mrf.mxu1  ;;  %v465_v5 = vpop.f32.mrf.mxu0  ;;  %v947_v29 = vld [vmem:[#allocation2] sm:$0xff] }
  0xe0   : > { %597 = vst.msk [vmem:[#allocation2 + $0xa0] sm:$0xff] %vm576_vm2, %v529_v2  ;;  %581 = vst.msk [vmem:[#allocation2 + $0x20] sm:$0xff] %vm576_vm2, %v465_v5 }
  0xe1   : > { %v2004_v4 = vpop.f32.mrf.mxu1  ;;  %v1988_v7 = vpop.f32.mrf.mxu0  ;;  %v950_v33 = vld [vmem:[#allocation2 + $0x18] sm:$0xff] }
  0xe2   : > { %600 = vst.msk [vmem:[#allocation2 + $0xb8] sm:$0xff] %vm576_vm2, %v2004_v4  ;;  %584 = vst.msk [vmem:[#allocation2 + $0x38] sm:$0xff] %vm576_vm2, %v1988_v7  ;;  %v2414_v4 = vld [vmem:[%s2619_s2] ss:$0 sm:$0xff] }
  0xe3   : > { %v532_v6 = vpop.f32.mrf.mxu1  ;;  %v468_v9 = vpop.f32.mrf.mxu0  ;;  %v948_v37 = vld [vmem:[#allocation2 + $0x8] sm:$0xff] }
  0xe4   : > { %598 = vst.msk [vmem:[#allocation2 + $0xa8] sm:$0xff] %vm576_vm2, %v532_v6  ;;  %582 = vst.msk [vmem:[#allocation2 + $0x28] sm:$0xff] %vm576_vm2, %v468_v9  ;;  %v2419_v9 = vld [vmem:[%s2620_s3] ss:$0 sm:$0xff] }
  0xe5   : > { %v2007_v8 = vpop.f32.mrf.mxu1  ;;  %v1991_v11 = vpop.f32.mrf.mxu0  ;;  %v953_v41 = vld [vmem:[#allocation2 + $0x30] sm:$0xff] }
  0xe6   : > { %603 = vst.msk [vmem:[#allocation2 + $0xd0] sm:$0xff] %vm576_vm2, %v2007_v8  ;;  %587 = vst.msk [vmem:[#allocation2 + $0x50] sm:$0xff] %vm576_vm2, %v1991_v11 }
  0xe7   : > { %v545_v10 = vpop.f32.mrf.mxu1  ;;  %v481_v13 = vpop.f32.mrf.mxu0  ;;  %v951_v46 = vld [vmem:[#allocation2 + $0x20] sm:$0xff] }
  0xe8   : > { %601 = vst.msk [vmem:[#allocation2 + $0xc0] sm:$0xff] %vm576_vm2, %v545_v10  ;;  %585 = vst.msk [vmem:[#allocation2 + $0x40] sm:$0xff] %vm576_vm2, %v481_v13 }
  0xe9   : > { %v2008_v12 = vpop.f32.mrf.mxu1  ;;  %v1992_v15 = vpop.f32.mrf.mxu0  ;;  %v954_v52 = vld [vmem:[#allocation2 + $0x38] sm:$0xff] }
  0xea   : > { %604 = vst.msk [vmem:[#allocation2 + $0xd8] sm:$0xff] %vm576_vm2, %v2008_v12  ;;  %588 = vst.msk [vmem:[#allocation2 + $0x58] sm:$0xff] %vm576_vm2, %v1992_v15 }
  0xeb   : > { %v548_v14 = vpop.f32.mrf.mxu1  ;;  %v484_v17 = vpop.f32.mrf.mxu0  ;;  %v952_v58 = vld [vmem:[#allocation2 + $0x28] sm:$0xff] }
  0xec   : > { %602 = vst.msk [vmem:[#allocation2 + $0xc8] sm:$0xff] %vm576_vm2, %v548_v14  ;;  %586 = vst.msk [vmem:[#allocation2 + $0x48] sm:$0xff] %vm576_vm2, %v484_v17 }
  0xed   : > { %v2011_v16 = vpop.f32.mrf.mxu1  ;;  %v1995_v19 = vpop.f32.mrf.mxu0  ;;  %v957_v0 = vld [vmem:[#allocation2 + $0x50] sm:$0xff] }
  0xee   : > { %607 = vst.msk [vmem:[#allocation2 + $0xf0] sm:$0xff] %vm576_vm2, %v2011_v16  ;;  %591 = vst.msk [vmem:[#allocation2 + $0x70] sm:$0xff] %vm576_vm2, %v1995_v19 }
  0xef   : > { %v561_v18 = vpop.f32.mrf.mxu1  ;;  %v497_v21 = vpop.f32.mrf.mxu0  ;;  %v955_v7 = vld [vmem:[#allocation2 + $0x40] sm:$0xff] }
  0xf0   : > { %605 = vst.msk [vmem:[#allocation2 + $0xe0] sm:$0xff] %vm576_vm2, %v561_v18  ;;  %589 = vst.msk [vmem:[#allocation2 + $0x60] sm:$0xff] %vm576_vm2, %v497_v21 }
  0xf1   : > { %v2012_v20 = vpop.f32.mrf.mxu1  ;;  %v1996_v23 = vpop.f32.mrf.mxu0  ;;  %v958_v15 = vld [vmem:[#allocation2 + $0x58] sm:$0xff] }
  0xf2   : > { %608 = vst.msk [vmem:[#allocation2 + $0xf8] sm:$0xff] %vm576_vm2, %v2012_v20  ;;  %592 = vst.msk [vmem:[#allocation2 + $0x78] sm:$0xff] %vm576_vm2, %v1996_v23 }
  0xf3   : > { %v564_v22 = vpop.f32.mrf.mxu1  ;;  %v500_v26 = vpop.f32.mrf.mxu0  ;;  %v956_v23 = vld [vmem:[#allocation2 + $0x48] sm:$0xff] }
  0xf4   : > { %606 = vst.msk [vmem:[#allocation2 + $0xe8] sm:$0xff] %vm576_vm2, %v564_v22  ;;  %590 = vst.msk [vmem:[#allocation2 + $0x68] sm:$0xff] %vm576_vm2, %v500_v26 }
  0xf5   : > { %v2019_v24 = vpop.f32.mrf.mxu1  ;;  %v2055_v30 = vpop.f32.mrf.mxu0 }
  0xf6   : > { %v981_v27 = vadd.f32 %v2019_v24, %v949_v25 }
  0xf7   : > { %v820_v28 = vpop.f32.mrf.mxu1  ;;  %v1254_v34 = vpop.f32.mrf.mxu0 }
  0xf8   : > { %1013 = vst.msk [vmem:[#allocation2 + $0x10] sm:$0xff] %vm576_vm2, %v981_v27  ;;  %v979_v31 = vadd.f32 %v947_v29, %v820_v28 }
  0xf9   : > { %v2020_v32 = vpop.f32.mrf.mxu1  ;;  %v2056_v38 = vpop.f32.mrf.mxu0 }
  0xfa   : > { %1011 = vst.msk [vmem:[#allocation2] sm:$0xff] %vm576_vm2, %v979_v31  ;;  %v982_v35 = vadd.f32 %v2020_v32, %v950_v33 }
  0xfb   : > { %v823_v36 = vpop.f32.mrf.mxu1  ;;  %v1257_v42 = vpop.f32.mrf.mxu0 }
  0xfc   : > { %1014 = vst.msk [vmem:[#allocation2 + $0x18] sm:$0xff] %vm576_vm2, %v982_v35  ;;  %v980_v39 = vadd.f32 %v948_v37, %v823_v36  ;;  %v961_v37 = vld [vmem:[#allocation2 + $0x70] sm:$0xff] }
  0xfd   : > { %v2023_v40 = vpop.f32.mrf.mxu1  ;;  %v2059_v47 = vpop.f32.mrf.mxu0 }
  0xfe   : > { %1012 = vst.msk [vmem:[#allocation2 + $0x8] sm:$0xff] %vm576_vm2, %v980_v39  ;;  %v985_v43 = vadd.f32 %v2023_v40, %v953_v41 }
  0xff   : > { %v1383_v44 = vld [vmem:[#allocation2 + $0x10] sm:$0xff]  ;;  %v836_v45 = vpop.f32.mrf.mxu1  ;;  %v1270_v53 = vpop.f32.mrf.mxu0 }
 0x100   : > { %v1415_v48 = vadd.f32 %v2055_v30, %v1383_v44  ;;  %1017 = vst.msk [vmem:[#allocation2 + $0x30] sm:$0xff] %vm576_vm2, %v985_v43  ;;  %v983_v49 = vadd.f32 %v951_v46, %v836_v45 }
 0x101   : > { %v1381_v50 = vld [vmem:[#allocation2] sm:$0xff]  ;;  %v2024_v51 = vpop.f32.mrf.mxu1  ;;  %v2060_v59 = vpop.f32.mrf.mxu0 }
 0x102   : > { %1447 = vst.msk [vmem:[#allocation2 + $0x10] sm:$0xff] %vm576_vm2, %v1415_v48  ;;  %v1413_v54 = vadd.f32 %v1381_v50, %v1254_v34  ;;  %1015 = vst.msk [vmem:[#allocation2 + $0x20] sm:$0xff] %vm576_vm2, %v983_v49  ;;  %v986_v55 = vadd.f32 %v2024_v51, %v954_v52 }
 0x103   : > { %v1384_v56 = vld [vmem:[#allocation2 + $0x18] sm:$0xff]  ;;  %v839_v57 = vpop.f32.mrf.mxu1  ;;  %v1273_v1 = vpop.f32.mrf.mxu0 }
 0x104   : > { %1445 = vst.msk [vmem:[#allocation2] sm:$0xff] %vm576_vm2, %v1413_v54  ;;  %v1416_v60 = vadd.f32 %v2056_v38, %v1384_v56  ;;  %1018 = vst.msk [vmem:[#allocation2 + $0x38] sm:$0xff] %vm576_vm2, %v986_v55  ;;  %v984_v61 = vadd.f32 %v952_v58, %v839_v57  ;;  %v962_v57 = vld [vmem:[#allocation2 + $0x78] sm:$0xff] }
 0x105   : > { %v1382_v62 = vld [vmem:[#allocation2 + $0x8] sm:$0xff]  ;;  %v2027_v63 = vpop.f32.mrf.mxu1  ;;  %v2063_v8 = vpop.f32.mrf.mxu0 }
 0x106   : > { %1448 = vst.msk [vmem:[#allocation2 + $0x18] sm:$0xff] %vm576_vm2, %v1416_v60  ;;  %v1414_v2 = vadd.f32 %v1382_v62, %v1257_v42  ;;  %1016 = vst.msk [vmem:[#allocation2 + $0x28] sm:$0xff] %vm576_vm2, %v984_v61  ;;  %v989_v3 = vadd.f32 %v2027_v63, %v957_v0 }
 0x107   : > { %v1387_v5 = vld [vmem:[#allocation2 + $0x30] sm:$0xff]  ;;  %v852_v6 = vpop.f32.mrf.mxu1  ;;  %v1286_v16 = vpop.f32.mrf.mxu0 }
 0x108   : > { %1446 = vst.msk [vmem:[#allocation2 + $0x8] sm:$0xff] %vm576_vm2, %v1414_v2  ;;  %v1419_v10 = vadd.f32 %v2059_v47, %v1387_v5  ;;  %1021 = vst.msk [vmem:[#allocation2 + $0x50] sm:$0xff] %vm576_vm2, %v989_v3  ;;  %v987_v11 = vadd.f32 %v955_v7, %v852_v6  ;;  %v959_v47 = vld [vmem:[#allocation2 + $0x60] sm:$0xff]  ;;  %v960_v3 = vld [vmem:[#allocation2 + $0x68] sm:$0xff] }
 0x109   : > { %v1479_v12 = vld [vmem:[#allocation2 + $0x10] sm:$0xff]  ;;  %v1385_v13 = vld [vmem:[#allocation2 + $0x20] sm:$0xff]  ;;  %v2028_v14 = vpop.f32.mrf.mxu1  ;;  %v2064_v24 = vpop.f32.mrf.mxu0 }
 0x10a   : > { %v1518_v17 = vmul.f32 %v2414_v4, %v1479_v12  ;;  %1451 = vst.msk [vmem:[#allocation2 + $0x30] sm:$0xff] %vm576_vm2, %v1419_v10  ;;  %v1417_v18 = vadd.f32 %v1385_v13, %v1270_v53  ;;  %1019 = vst.msk [vmem:[#allocation2 + $0x40] sm:$0xff] %vm576_vm2, %v987_v11  ;;  %v990_v19 = vadd.f32 %v2028_v14, %v958_v15  ;;  %v965_v15 = vld [vmem:[#allocation2 + $0x90] sm:$0xff] }
 0x10b   : > { %v1477_v20 = vld [vmem:[#allocation2] sm:$0xff]  ;;  %v1388_v21 = vld [vmem:[#allocation2 + $0x38] sm:$0xff]  ;;  %v855_v22 = vpop.f32.mrf.mxu1  ;;  %v1289_v32 = vpop.f32.mrf.mxu0 }
 0x10c   : > { %v1557_v25 = vadd.f32 %v2419_v9, %v1518_v17  ;;  %v1516_v26 = vmul.f32 %v2414_v4, %v1477_v20  ;;  %1449 = vst.msk [vmem:[#allocation2 + $0x20] sm:$0xff] %vm576_vm2, %v1417_v18  ;;  %v1420_v27 = vadd.f32 %v2060_v59, %v1388_v21  ;;  %1022 = vst.msk [vmem:[#allocation2 + $0x58] sm:$0xff] %vm576_vm2, %v990_v19  ;;  %v963_v19 = vld [vmem:[#allocation2 + $0x80] sm:$0xff] }
 0x10d   : > { %v988_v28 = vadd.f32 %v956_v23, %v855_v22  ;;  %v1480_v29 = vld [vmem:[#allocation2 + $0x18] sm:$0xff]  ;;  %v1386_v30 = vld [vmem:[#allocation2 + $0x28] sm:$0xff]  ;;  %v2031_v31 = vpop.f32.mrf.mxu1  ;;  %v2067_v42 = vpop.f32.mrf.mxu0 }
 0x10e   : > { %v1589_v33 = vmax.f32 %v1557_v25, 0.0  ;;  %v1555_v34 = vadd.f32 %v2419_v9, %v1516_v26  ;;  %v1519_v35 = vmul.f32 %v2414_v4, %v1480_v29  ;;  %1452 = vst.msk [vmem:[#allocation2 + $0x38] sm:$0xff] %vm576_vm2, %v1420_v27  ;;  %v1418_v36 = vadd.f32 %v1386_v30, %v1273_v1  ;;  %v966_v29 = vld [vmem:[#allocation2 + $0x98] sm:$0xff] }
 0x10f   : > { %1020 = vst.msk [vmem:[#allocation2 + $0x48] sm:$0xff] %vm576_vm2, %v988_v28  ;;  %v1478_v38 = vld [vmem:[#allocation2 + $0x8] sm:$0xff]  ;;  %v1391_v39 = vld [vmem:[#allocation2 + $0x50] sm:$0xff]  ;;  %v993_v40 = vadd.f32 %v2031_v31, %v961_v37  ;;  %v868_v41 = vpop.f32.mrf.mxu1  ;;  %v1302_v52 = vpop.f32.mrf.mxu0 }
 0x110   : > { %1621 = vst.msk [vmem:[%s2434_s19 + $0x10] sm:$0xff] %vm576_vm2, %v1589_v33  ;;  %v1587_v43 = vmax.f32 %v1555_v34, 0.0  ;;  %v1558_v44 = vadd.f32 %v2419_v9, %v1519_v35  ;;  %v1517_v45 = vmul.f32 %v2414_v4, %v1478_v38  ;;  %1450 = vst.msk [vmem:[#allocation2 + $0x28] sm:$0xff] %vm576_vm2, %v1418_v36  ;;  %v1423_v46 = vadd.f32 %v2063_v8, %v1391_v39  ;;  %v964_v39 = vld [vmem:[#allocation2 + $0x88] sm:$0xff] }
 0x111   : > { %v1483_v48 = vld [vmem:[#allocation2 + $0x30] sm:$0xff]  ;;  %v1389_v49 = vld [vmem:[#allocation2 + $0x40] sm:$0xff]  ;;  %1025 = vst.msk [vmem:[#allocation2 + $0x70] sm:$0xff] %vm576_vm2, %v993_v40  ;;  %v991_v50 = vadd.f32 %v959_v47, %v868_v41  ;;  %v2032_v51 = vpop.f32.mrf.mxu1  ;;  %v2068_v62 = vpop.f32.mrf.mxu0 }
 0x112   : > { %1619 = vst.msk [vmem:[%s2434_s19] sm:$0xff] %vm576_vm2, %v1587_v43  ;;  %v1590_v53 = vmax.f32 %v1558_v44, 0.0  ;;  %v1556_v54 = vadd.f32 %v2419_v9, %v1517_v45  ;;  %v1522_v55 = vmul.f32 %v2414_v4, %v1483_v48  ;;  %1455 = vst.msk [vmem:[#allocation2 + $0x50] sm:$0xff] %vm576_vm2, %v1423_v46  ;;  %v1421_v56 = vadd.f32 %v1389_v49, %v1286_v16  ;;  %v969_v49 = vld [vmem:[#allocation2 + $0xb0] sm:$0xff] }
 0x113   : > { %v1481_v58 = vld [vmem:[#allocation2 + $0x20] sm:$0xff]  ;;  %v1392_v59 = vld [vmem:[#allocation2 + $0x58] sm:$0xff]  ;;  %1023 = vst.msk [vmem:[#allocation2 + $0x60] sm:$0xff] %vm576_vm2, %v991_v50  ;;  %v994_v60 = vadd.f32 %v2032_v51, %v962_v57  ;;  %v871_v61 = vpop.f32.mrf.mxu1  ;;  %v1305_v10 = vpop.f32.mrf.mxu0 }
 0x114   : > { %1622 = vst.msk [vmem:[%s2434_s19 + $0x18] sm:$0xff] %vm576_vm2, %v1590_v53  ;;  %v1588_v63 = vmax.f32 %v1556_v54, 0.0  ;;  %v1561_v0 = vadd.f32 %v2419_v9, %v1522_v55  ;;  %v1520_v1 = vmul.f32 %v2414_v4, %v1481_v58  ;;  %1453 = vst.msk [vmem:[#allocation2 + $0x40] sm:$0xff] %vm576_vm2, %v1421_v56  ;;  %v1424_v2 = vadd.f32 %v2064_v24, %v1392_v59  ;;  %v967_v59 = vld [vmem:[#allocation2 + $0xa0] sm:$0xff] }
 0x115   : > { %v1484_v5 = vld [vmem:[#allocation2 + $0x38] sm:$0xff]  ;;  %1026 = vst.msk [vmem:[#allocation2 + $0x78] sm:$0xff] %vm576_vm2, %v994_v60  ;;  %v992_v7 = vadd.f32 %v960_v3, %v871_v61  ;;  %v2035_v8 = vpop.f32.mrf.mxu1  ;;  %v2071_v20 = vpop.f32.mrf.mxu0 }
 0x116   : > { %v1390_v6 = vld [vmem:[#allocation2 + $0x48] sm:$0xff]  ;;  %1620 = vst.msk [vmem:[%s2434_s19 + $0x8] sm:$0xff] %vm576_vm2, %v1588_v63  ;;  %v1593_v11 = vmax.f32 %v1561_v0, 0.0  ;;  %v1559_v12 = vadd.f32 %v2419_v9, %v1520_v1  ;;  %v1523_v13 = vmul.f32 %v2414_v4, %v1484_v5  ;;  %1456 = vst.msk [vmem:[#allocation2 + $0x58] sm:$0xff] %vm576_vm2, %v1424_v2  ;;  %v997_v17 = vadd.f32 %v2035_v8, %v965_v15 }
 0x117   : > { %v1422_v14 = vadd.f32 %v1390_v6, %v1289_v32  ;;  %v1482_v16 = vld [vmem:[#allocation2 + $0x28] sm:$0xff]  ;;  %1024 = vst.msk [vmem:[#allocation2 + $0x68] sm:$0xff] %vm576_vm2, %v992_v7  ;;  %v884_v18 = vpop.f32.mrf.mxu1  ;;  %v1318_v30 = vpop.f32.mrf.mxu0  ;;  %v970_v6 = vld [vmem:[#allocation2 + $0xb8] sm:$0xff] }
 0x118   : > { %1625 = vst.msk [vmem:[%s2434_s19 + $0x30] sm:$0xff] %vm576_vm2, %v1593_v11  ;;  %v1591_v21 = vmax.f32 %v1559_v12, 0.0  ;;  %v1562_v22 = vadd.f32 %v2419_v9, %v1523_v13  ;;  %v1521_v23 = vmul.f32 %v2414_v4, %v1482_v16  ;;  %v1395_v24 = vld [vmem:[#allocation2 + $0x70] sm:$0xff]  ;;  %v995_v25 = vadd.f32 %v963_v19, %v884_v18  ;;  %1029 = vst.msk [vmem:[#allocation2 + $0x90] sm:$0xff] %vm576_vm2, %v997_v17  ;;  %v968_v17 = vld [vmem:[#allocation2 + $0xa8] sm:$0xff] }
 0x119   : > { %1454 = vst.msk [vmem:[#allocation2 + $0x48] sm:$0xff] %vm576_vm2, %v1422_v14  ;;  %v1487_v26 = vld [vmem:[#allocation2 + $0x50] sm:$0xff]  ;;  %v1427_v27 = vadd.f32 %v2067_v42, %v1395_v24  ;;  %v2036_v28 = vpop.f32.mrf.mxu1  ;;  %v2072_v40 = vpop.f32.mrf.mxu0 }
 0x11a   : > { %1623 = vst.msk [vmem:[%s2434_s19 + $0x20] sm:$0xff] %vm576_vm2, %v1591_v21  ;;  %v1594_v31 = vmax.f32 %v1562_v22, 0.0  ;;  %v1560_v32 = vadd.f32 %v2419_v9, %v1521_v23  ;;  %v1526_v33 = vmul.f32 %v2414_v4, %v1487_v26  ;;  %v1393_v34 = vld [vmem:[#allocation2 + $0x60] sm:$0xff]  ;;  %1027 = vst.msk [vmem:[#allocation2 + $0x80] sm:$0xff] %vm576_vm2, %v995_v25  ;;  %v998_v35 = vadd.f32 %v2036_v28, %v966_v29 }
 0x11b   : > { %v1485_v36 = vld [vmem:[#allocation2 + $0x40] sm:$0xff]  ;;  %1459 = vst.msk [vmem:[#allocation2 + $0x70] sm:$0xff] %vm576_vm2, %v1427_v27  ;;  %v1425_v37 = vadd.f32 %v1393_v34, %v1302_v52  ;;  %v887_v38 = vpop.f32.mrf.mxu1  ;;  %v1321_v50 = vpop.f32.mrf.mxu0  ;;  %v973_v27 = vld [vmem:[#allocation2 + $0xd0] sm:$0xff] }
 0x11c   : > { %1626 = vst.msk [vmem:[%s2434_s19 + $0x38] sm:$0xff] %vm576_vm2, %v1594_v31  ;;  %v1592_v41 = vmax.f32 %v1560_v32, 0.0  ;;  %v1565_v42 = vadd.f32 %v2419_v9, %v1526_v33  ;;  %v1524_v43 = vmul.f32 %v2414_v4, %v1485_v36  ;;  %v1396_v44 = vld [vmem:[#allocation2 + $0x78] sm:$0xff]  ;;  %1030 = vst.msk [vmem:[#allocation2 + $0x98] sm:$0xff] %vm576_vm2, %v998_v35  ;;  %v996_v45 = vadd.f32 %v964_v39, %v887_v38 }
 0x11d   : > { %v1488_v46 = vld [vmem:[#allocation2 + $0x58] sm:$0xff]  ;;  %1457 = vst.msk [vmem:[#allocation2 + $0x60] sm:$0xff] %vm576_vm2, %v1425_v37  ;;  %v1428_v47 = vadd.f32 %v2068_v62, %v1396_v44  ;;  %v2039_v48 = vpop.f32.mrf.mxu1  ;;  %v2075_v60 = vpop.f32.mrf.mxu0  ;;  %v971_v37 = vld [vmem:[#allocation2 + $0xc0] sm:$0xff] }
 0x11e   : > { %1624 = vst.msk [vmem:[%s2434_s19 + $0x28] sm:$0xff] %vm576_vm2, %v1592_v41  ;;  %v1597_v51 = vmax.f32 %v1565_v42, 0.0  ;;  %v1563_v52 = vadd.f32 %v2419_v9, %v1524_v43  ;;  %v1527_v53 = vmul.f32 %v2414_v4, %v1488_v46  ;;  %v1394_v54 = vld [vmem:[#allocation2 + $0x68] sm:$0xff]  ;;  %1028 = vst.msk [vmem:[#allocation2 + $0x88] sm:$0xff] %vm576_vm2, %v996_v45  ;;  %v1001_v55 = vadd.f32 %v2039_v48, %v969_v49 }
 0x11f   : > { %1460 = vst.msk [vmem:[#allocation2 + $0x78] sm:$0xff] %vm576_vm2, %v1428_v47  ;;  %v1426_v57 = vadd.f32 %v1394_v54, %v1305_v10  ;;  %v900_v58 = vpop.f32.mrf.mxu1  ;;  %v1399_v0 = vld [vmem:[#allocation2 + $0x90] sm:$0xff]  ;;  %v1334_v7 = vpop.f32.mrf.mxu0  ;;  %v974_v47 = vld [vmem:[#allocation2 + $0xd8] sm:$0xff] }
 0x120   : > { %v1486_v56 = vld [vmem:[#allocation2 + $0x48] sm:$0xff]  ;;  %1629 = vst.msk [vmem:[%s2434_s19 + $0x50] sm:$0xff] %vm576_vm2, %v1597_v51  ;;  %v1595_v61 = vmax.f32 %v1563_v52, 0.0  ;;  %v1566_v62 = vadd.f32 %v2419_v9, %v1527_v53  ;;  %1033 = vst.msk [vmem:[#allocation2 + $0xb0] sm:$0xff] %vm576_vm2, %v1001_v55  ;;  %v999_v1 = vadd.f32 %v967_v59, %v900_v58  ;;  %v1431_v2 = vadd.f32 %v2071_v20, %v1399_v0 }
 0x121   : > { %v1525_v63 = vmul.f32 %v2414_v4, %v1486_v56  ;;  %1458 = vst.msk [vmem:[#allocation2 + $0x68] sm:$0xff] %vm576_vm2, %v1426_v57  ;;  %v1397_v3 = vld [vmem:[#allocation2 + $0x80] sm:$0xff]  ;;  %v2040_v5 = vpop.f32.mrf.mxu1  ;;  %v2076_v18 = vpop.f32.mrf.mxu0  ;;  %v972_v58 = vld [vmem:[#allocation2 + $0xc8] sm:$0xff] }
 0x122   : > { %1627 = vst.msk [vmem:[%s2434_s19 + $0x40] sm:$0xff] %vm576_vm2, %v1595_v61  ;;  %v1598_v8 = vmax.f32 %v1566_v62, 0.0  ;;  %v1491_v11 = vld [vmem:[#allocation2 + $0x70] sm:$0xff]  ;;  %v1429_v12 = vadd.f32 %v1397_v3, %v1318_v30  ;;  %1031 = vst.msk [vmem:[#allocation2 + $0xa0] sm:$0xff] %vm576_vm2, %v999_v1  ;;  %v1002_v13 = vadd.f32 %v2040_v5, %v970_v6 }
 0x123   : > { %v1564_v10 = vadd.f32 %v2419_v9, %v1525_v63  ;;  %v1530_v14 = vmul.f32 %v2414_v4, %v1491_v11  ;;  %1463 = vst.msk [vmem:[#allocation2 + $0x90] sm:$0xff] %vm576_vm2, %v1431_v2  ;;  %v1400_v15 = vld [vmem:[#allocation2 + $0x98] sm:$0xff]  ;;  %v903_v16 = vpop.f32.mrf.mxu1  ;;  %v1337_v28 = vpop.f32.mrf.mxu0  ;;  %v977_v5 = vld [vmem:[#allocation2 + $0xf0] sm:$0xff] }
 0x124   : > { %1630 = vst.msk [vmem:[%s2434_s19 + $0x58] sm:$0xff] %vm576_vm2, %v1598_v8  ;;  %v1489_v20 = vld [vmem:[#allocation2 + $0x60] sm:$0xff]  ;;  %1461 = vst.msk [vmem:[#allocation2 + $0x80] sm:$0xff] %vm576_vm2, %v1429_v12  ;;  %v1432_v21 = vadd.f32 %v2072_v40, %v1400_v15  ;;  %v1000_v22 = vadd.f32 %v968_v17, %v903_v16 }
 0x125   : > { %v1596_v19 = vmax.f32 %v1564_v10, 0.0  ;;  %1034 = vst.msk [vmem:[#allocation2 + $0xb8] sm:$0xff] %vm576_vm2, %v1002_v13  ;;  %v1569_v23 = vadd.f32 %v2419_v9, %v1530_v14  ;;  %v1528_v24 = vmul.f32 %v2414_v4, %v1489_v20  ;;  %v1398_v25 = vld [vmem:[#allocation2 + $0x88] sm:$0xff]  ;;  %v2043_v26 = vpop.f32.mrf.mxu1  ;;  %v2079_v38 = vpop.f32.mrf.mxu0  ;;  %v975_v20 = vld [vmem:[#allocation2 + $0xe0] sm:$0xff] }
 0x126   : > { %v1492_v29 = vld [vmem:[#allocation2 + $0x78] sm:$0xff]  ;;  %1464 = vst.msk [vmem:[#allocation2 + $0x98] sm:$0xff] %vm576_vm2, %v1432_v21  ;;  %v1430_v30 = vadd.f32 %v1398_v25, %v1321_v50  ;;  %1032 = vst.msk [vmem:[#allocation2 + $0xa8] sm:$0xff] %vm576_vm2, %v1000_v22  ;;  %v1005_v31 = vadd.f32 %v2043_v26, %v973_v27 }
 0x127   : > { %1628 = vst.msk [vmem:[%s2434_s19 + $0x48] sm:$0xff] %vm576_vm2, %v1596_v19  ;;  %v1601_v32 = vmax.f32 %v1569_v23, 0.0  ;;  %v1567_v33 = vadd.f32 %v2419_v9, %v1528_v24  ;;  %v1531_v34 = vmul.f32 %v2414_v4, %v1492_v29  ;;  %v1403_v35 = vld [vmem:[#allocation2 + $0xb0] sm:$0xff]  ;;  %v916_v36 = vpop.f32.mrf.mxu1  ;;  %v1350_v48 = vpop.f32.mrf.mxu0  ;;  %v978_v29 = vld [vmem:[#allocation2 + $0xf8] sm:$0xff] }
 0x128   : > { %v1490_v39 = vld [vmem:[#allocation2 + $0x68] sm:$0xff]  ;;  %1462 = vst.msk [vmem:[#allocation2 + $0x88] sm:$0xff] %vm576_vm2, %v1430_v30  ;;  %v1435_v40 = vadd.f32 %v2075_v60, %v1403_v35  ;;  %1037 = vst.msk [vmem:[#allocation2 + $0xd0] sm:$0xff] %vm576_vm2, %v1005_v31  ;;  %v1003_v41 = vadd.f32 %v971_v37, %v916_v36 }
 0x129   : > { %1633 = vst.msk [vmem:[%s2434_s19 + $0x70] sm:$0xff] %vm576_vm2, %v1601_v32  ;;  %v1599_v42 = vmax.f32 %v1567_v33, 0.0  ;;  %v1570_v43 = vadd.f32 %v2419_v9, %v1531_v34  ;;  %v1529_v44 = vmul.f32 %v2414_v4, %v1490_v39  ;;  %v1401_v45 = vld [vmem:[#allocation2 + $0xa0] sm:$0xff]  ;;  %v2044_v46 = vpop.f32.mrf.mxu1  ;;  %v2080_v59 = vpop.f32.mrf.mxu0  ;;  %v976_v39 = vld [vmem:[#allocation2 + $0xe8] sm:$0xff] }
 0x12a   : > { %v1495_v49 = vld [vmem:[#allocation2 + $0x90] sm:$0xff]  ;;  %1467 = vst.msk [vmem:[#allocation2 + $0xb0] sm:$0xff] %vm576_vm2, %v1435_v40  ;;  %v1433_v50 = vadd.f32 %v1401_v45, %v1334_v7  ;;  %1035 = vst.msk [vmem:[#allocation2 + $0xc0] sm:$0xff] %vm576_vm2, %v1003_v41  ;;  %v1006_v51 = vadd.f32 %v2044_v46, %v974_v47 }
 0x12b   : > { %1631 = vst.msk [vmem:[%s2434_s19 + $0x60] sm:$0xff] %vm576_vm2, %v1599_v42  ;;  %v1602_v52 = vmax.f32 %v1570_v43, 0.0  ;;  %v1568_v53 = vadd.f32 %v2419_v9, %v1529_v44  ;;  %v1534_v54 = vmul.f32 %v2414_v4, %v1495_v49  ;;  %v1493_v55 = vld [vmem:[#allocation2 + $0x80] sm:$0xff]  ;;  %v919_v57 = vpop.f32.mrf.mxu1  ;;  %v1353_v11 = vpop.f32.mrf.mxu0 }
 0x12c   : > { %v1404_v56 = vld [vmem:[#allocation2 + $0xb8] sm:$0xff]  ;;  %v1532_v60 = vmul.f32 %v2414_v4, %v1493_v55  ;;  %1465 = vst.msk [vmem:[#allocation2 + $0xa0] sm:$0xff] %vm576_vm2, %v1433_v50  ;;  %1038 = vst.msk [vmem:[#allocation2 + $0xd8] sm:$0xff] %vm576_vm2, %v1006_v51  ;;  %v1004_v62 = vadd.f32 %v972_v58, %v919_v57 }
 0x12d   : > { %v1436_v61 = vadd.f32 %v2076_v18, %v1404_v56  ;;  %1634 = vst.msk [vmem:[%s2434_s19 + $0x78] sm:$0xff] %vm576_vm2, %v1602_v52  ;;  %v1600_v63 = vmax.f32 %v1568_v53, 0.0  ;;  %v1573_v0 = vadd.f32 %v2419_v9, %v1534_v54  ;;  %v1496_v1 = vld [vmem:[#allocation2 + $0x98] sm:$0xff]  ;;  %v1402_v2 = vld [vmem:[#allocation2 + $0xa8] sm:$0xff]  ;;  %v2047_v3 = vpop.f32.mrf.mxu1  ;;  %v2083_v30 = vpop.f32.mrf.mxu0 }
 0x12e   : > { %v1571_v6 = vadd.f32 %v2419_v9, %v1532_v60  ;;  %v1535_v7 = vmul.f32 %v2414_v4, %v1496_v1  ;;  %v1434_v8 = vadd.f32 %v1402_v2, %v1337_v28  ;;  %1036 = vst.msk [vmem:[#allocation2 + $0xc8] sm:$0xff] %vm576_vm2, %v1004_v62  ;;  %v1009_v10 = vadd.f32 %v2047_v3, %v977_v5 }
 0x12f   : > { %1468 = vst.msk [vmem:[#allocation2 + $0xb8] sm:$0xff] %vm576_vm2, %v1436_v61  ;;  %1632 = vst.msk [vmem:[%s2434_s19 + $0x68] sm:$0xff] %vm576_vm2, %v1600_v63  ;;  %v1605_v12 = vmax.f32 %v1573_v0, 0.0  ;;  %v1494_v13 = vld [vmem:[#allocation2 + $0x88] sm:$0xff]  ;;  %v1407_v14 = vld [vmem:[#allocation2 + $0xd0] sm:$0xff]  ;;  %v932_v15 = vpop.f32.mrf.mxu1  ;;  %v1366_v47 = vpop.f32.mrf.mxu0 }
 0x130   : > { %v1603_v16 = vmax.f32 %v1571_v6, 0.0  ;;  %v1574_v17 = vadd.f32 %v2419_v9, %v1535_v7  ;;  %v1533_v18 = vmul.f32 %v2414_v4, %v1494_v13  ;;  %1466 = vst.msk [vmem:[#allocation2 + $0xa8] sm:$0xff] %vm576_vm2, %v1434_v8  ;;  %v1439_v19 = vadd.f32 %v2079_v38, %v1407_v14  ;;  %1041 = vst.msk [vmem:[#allocation2 + $0xf0] sm:$0xff] %vm576_vm2, %v1009_v10 }
 0x131   : > { %1637 = vst.msk [vmem:[%s2434_s19 + $0x90] sm:$0xff] %vm576_vm2, %v1605_v12  ;;  %v1499_v21 = vld [vmem:[#allocation2 + $0xb0] sm:$0xff]  ;;  %v1405_v22 = vld [vmem:[#allocation2 + $0xc0] sm:$0xff]  ;;  %v1007_v23 = vadd.f32 %v975_v20, %v932_v15  ;;  %v2048_v24 = vpop.f32.mrf.mxu1 }
 0x132   : > { %1635 = vst.msk [vmem:[%s2434_s19 + $0x80] sm:$0xff] %vm576_vm2, %v1603_v16  ;;  %v1606_v25 = vmax.f32 %v1574_v17, 0.0  ;;  %v1572_v26 = vadd.f32 %v2419_v9, %v1533_v18  ;;  %v1538_v27 = vmul.f32 %v2414_v4, %v1499_v21  ;;  %1471 = vst.msk [vmem:[#allocation2 + $0xd0] sm:$0xff] %vm576_vm2, %v1439_v19  ;;  %v1437_v28 = vadd.f32 %v1405_v22, %v1350_v48 }
 0x133   : > { %v1497_v31 = vld [vmem:[#allocation2 + $0xa0] sm:$0xff]  ;;  %v1408_v32 = vld [vmem:[#allocation2 + $0xd8] sm:$0xff]  ;;  %1039 = vst.msk [vmem:[#allocation2 + $0xe0] sm:$0xff] %vm576_vm2, %v1007_v23  ;;  %v1010_v33 = vadd.f32 %v2048_v24, %v978_v29  ;;  %v935_v34 = vpop.f32.mrf.mxu1 }
 0x134   : > { %1638 = vst.msk [vmem:[%s2434_s19 + $0x98] sm:$0xff] %vm576_vm2, %v1606_v25  ;;  %v1604_v35 = vmax.f32 %v1572_v26, 0.0  ;;  %v1577_v36 = vadd.f32 %v2419_v9, %v1538_v27  ;;  %v1536_v37 = vmul.f32 %v2414_v4, %v1497_v31  ;;  %1469 = vst.msk [vmem:[#allocation2 + $0xc0] sm:$0xff] %vm576_vm2, %v1437_v28  ;;  %v1440_v38 = vadd.f32 %v2080_v59, %v1408_v32  ;;  %v2084_v59 = vpop.f32.mrf.mxu0 }
 0x135   : > { %v1406_v41 = vld [vmem:[#allocation2 + $0xc8] sm:$0xff]  ;;  %1042 = vst.msk [vmem:[#allocation2 + $0xf8] sm:$0xff] %vm576_vm2, %v1010_v33  ;;  %v1008_v42 = vadd.f32 %v976_v39, %v935_v34 }
 0x136   : > { %v1500_v40 = vld [vmem:[#allocation2 + $0xb8] sm:$0xff]  ;;  %1636 = vst.msk [vmem:[%s2434_s19 + $0x88] sm:$0xff] %vm576_vm2, %v1604_v35  ;;  %v1609_v43 = vmax.f32 %v1577_v36, 0.0  ;;  %v1575_v44 = vadd.f32 %v2419_v9, %v1536_v37  ;;  %1472 = vst.msk [vmem:[#allocation2 + $0xd8] sm:$0xff] %vm576_vm2, %v1440_v38  ;;  %v1438_v46 = vadd.f32 %v1406_v41, %v1353_v11  ;;  %v1369_v8 = vpop.f32.mrf.mxu0 }
 0x137   : > { %v1539_v45 = vmul.f32 %v2414_v4, %v1500_v40  ;;  %v1498_v48 = vld [vmem:[#allocation2 + $0xa8] sm:$0xff]  ;;  %v1411_v49 = vld [vmem:[#allocation2 + $0xf0] sm:$0xff]  ;;  %1040 = vst.msk [vmem:[#allocation2 + $0xe8] sm:$0xff] %vm576_vm2, %v1008_v42 }
 0x138   : > { %1641 = vst.msk [vmem:[%s2434_s19 + $0xb0] sm:$0xff] %vm576_vm2, %v1609_v43  ;;  %v1607_v50 = vmax.f32 %v1575_v44, 0.0  ;;  %v1537_v52 = vmul.f32 %v2414_v4, %v1498_v48  ;;  %1470 = vst.msk [vmem:[#allocation2 + $0xc8] sm:$0xff] %vm576_vm2, %v1438_v46  ;;  %v1443_v53 = vadd.f32 %v2083_v30, %v1411_v49 }
 0x139   : > { %v1578_v51 = vadd.f32 %v2419_v9, %v1539_v45  ;;  %v1503_v54 = vld [vmem:[#allocation2 + $0xd0] sm:$0xff] }
 0x13a   : > { %1639 = vst.msk [vmem:[%s2434_s19 + $0xa0] sm:$0xff] %vm576_vm2, %v1607_v50  ;;  %v1576_v56 = vadd.f32 %v2419_v9, %v1537_v52  ;;  %v1542_v57 = vmul.f32 %v2414_v4, %v1503_v54  ;;  %1475 = vst.msk [vmem:[#allocation2 + $0xf0] sm:$0xff] %vm576_vm2, %v1443_v53  ;;  %v1409_v58 = vld [vmem:[#allocation2 + $0xe0] sm:$0xff] }
 0x13b   : > { %v1610_v55 = vmax.f32 %v1578_v51, 0.0  ;;  %v1501_v60 = vld [vmem:[#allocation2 + $0xc0] sm:$0xff]  ;;  %v1441_v61 = vadd.f32 %v1409_v58, %v1366_v47 }
 0x13c   : > { %v1608_v62 = vmax.f32 %v1576_v56, 0.0  ;;  %v1581_v63 = vadd.f32 %v2419_v9, %v1542_v57  ;;  %v1540_v0 = vmul.f32 %v2414_v4, %v1501_v60  ;;  %v1412_v1 = vld [vmem:[#allocation2 + $0xf8] sm:$0xff] }
 0x13d   : > { %1642 = vst.msk [vmem:[%s2434_s19 + $0xb8] sm:$0xff] %vm576_vm2, %v1610_v55  ;;  %v1504_v2 = vld [vmem:[#allocation2 + $0xd8] sm:$0xff]  ;;  %1473 = vst.msk [vmem:[#allocation2 + $0xe0] sm:$0xff] %vm576_vm2, %v1441_v61  ;;  %v1444_v3 = vadd.f32 %v2084_v59, %v1412_v1 }
 0x13e   : > { %1640 = vst.msk [vmem:[%s2434_s19 + $0xa8] sm:$0xff] %vm576_vm2, %v1608_v62  ;;  %v1613_v5 = vmax.f32 %v1581_v63, 0.0  ;;  %v1579_v6 = vadd.f32 %v2419_v9, %v1540_v0  ;;  %v1543_v7 = vmul.f32 %v2414_v4, %v1504_v2  ;;  %v1410_v10 = vld [vmem:[#allocation2 + $0xe8] sm:$0xff] }
 0x13f   : > { %v1502_v11 = vld [vmem:[#allocation2 + $0xc8] sm:$0xff]  ;;  %1476 = vst.msk [vmem:[#allocation2 + $0xf8] sm:$0xff] %vm576_vm2, %v1444_v3  ;;  %v1442_v12 = vadd.f32 %v1410_v10, %v1369_v8 }
 0x140   : > { %1645 = vst.msk [vmem:[%s2434_s19 + $0xd0] sm:$0xff] %vm576_vm2, %v1613_v5  ;;  %v1611_v13 = vmax.f32 %v1579_v6, 0.0  ;;  %v1582_v14 = vadd.f32 %v2419_v9, %v1543_v7  ;;  %v1541_v15 = vmul.f32 %v2414_v4, %v1502_v11 }
 0x141   : > { %v1507_v16 = vld [vmem:[#allocation2 + $0xf0] sm:$0xff]  ;;  %1474 = vst.msk [vmem:[#allocation2 + $0xe8] sm:$0xff] %vm576_vm2, %v1442_v12 }
 0x142   : > { %1643 = vst.msk [vmem:[%s2434_s19 + $0xc0] sm:$0xff] %vm576_vm2, %v1611_v13  ;;  %v1614_v17 = vmax.f32 %v1582_v14, 0.0  ;;  %v1580_v18 = vadd.f32 %v2419_v9, %v1541_v15  ;;  %v1546_v19 = vmul.f32 %v2414_v4, %v1507_v16 }
 0x144   : > { %1646 = vst.msk [vmem:[%s2434_s19 + $0xd8] sm:$0xff] %vm576_vm2, %v1614_v17  ;;  %v1612_v20 = vmax.f32 %v1580_v18, 0.0  ;;  %v1585_v21 = vadd.f32 %v2419_v9, %v1546_v19  ;;  %v1505_v22 = vld [vmem:[#allocation2 + $0xe0] sm:$0xff] }
 0x145   : > { %v1544_v23 = vmul.f32 %v2414_v4, %v1505_v22 }
 0x146   : > { %1644 = vst.msk [vmem:[%s2434_s19 + $0xc8] sm:$0xff] %vm576_vm2, %v1612_v20  ;;  %v1617_v24 = vmax.f32 %v1585_v21, 0.0  ;;  %v1508_v25 = vld [vmem:[#allocation2 + $0xf8] sm:$0xff] }
 0x147   : > { %v1583_v26 = vadd.f32 %v2419_v9, %v1544_v23  ;;  %v1547_v27 = vmul.f32 %v2414_v4, %v1508_v25 }
 0x148   : > { %1649 = vst.msk [vmem:[%s2434_s19 + $0xf0] sm:$0xff] %vm576_vm2, %v1617_v24  ;;  %v1506_v28 = vld [vmem:[#allocation2 + $0xe8] sm:$0xff] }
 0x149   : > { %v1615_v29 = vmax.f32 %v1583_v26, 0.0  ;;  %v1586_v30 = vadd.f32 %v2419_v9, %v1547_v27  ;;  %v1545_v31 = vmul.f32 %v2414_v4, %v1506_v28 }
 0x14b   : > { %1647 = vst.msk [vmem:[%s2434_s19 + $0xe0] sm:$0xff] %vm576_vm2, %v1615_v29  ;;  %v1618_v32 = vmax.f32 %v1586_v30, 0.0  ;;  %v1584_v33 = vadd.f32 %v2419_v9, %v1545_v31 }
 0x14d   : > { %1650 = vst.msk [vmem:[%s2434_s19 + $0xf8] sm:$0xff] %vm576_vm2, %v1618_v32  ;;  %v1616_v34 = vmax.f32 %v1584_v33, 0.0 }
 0x14f   : > { %1648 = vst.msk [vmem:[%s2434_s19 + $0xe8] sm:$0xff] %vm576_vm2, %v1616_v34 }
 0x150 PF: > { %s14_s17 = sadd.s32 1, %s2194_s17   ;;  %s2622_s15 = smov %s2190_s16 }
 0x151   : > { %p11_p5 = scmp.ge.s32.totalorder %s14_s17, 4   ;;  %s2623_s16 = smov %s2625_s18 }
 0x153   :  { %13 = sbr.rel (!%p11_p5) target bundleno = 2 (0x2), region = 70 }

</bundles_post_ra>
